<compile_context>
chip_gen: v5e
topology: v5e:2x2
jax: 0.10.0
libtpu: 0.0.40
codegen_flags: <defaults>
</compile_context>

<pallas_src>
import jax
import jax.numpy as jnp
from jax.experimental import pallas as pl
from jax.experimental.pallas import tpu as pltpu

# ---------------- small synthetic BERT config ----------------
B, S, H, NH, I, L, V = 2, 8, 32, 4, 64, 2, 128   # batch, seq, hidden, heads, ffn, layers, vocab
HD = H // NH
MAX_POS = 16
TYPE_VOCAB = 2
EPS = 1e-12


# ---------------- in-kernel helpers (operate on values, not refs) ----------------
def _layer_norm(x, g, b):
    mu = jnp.mean(x, axis=-1, keepdims=True)
    var = jnp.mean((x - mu) ** 2, axis=-1, keepdims=True)
    return (x - mu) * jax.lax.rsqrt(var + EPS) * g + b


def _gelu(x):
    # tanh-approx GELU (EUP tanh); see TODO(synk) above re exact erf.
    return 0.5 * x * (1.0 + jnp.tanh(0.7978845608028654 * (x + 0.044715 * x * x * x)))


# ---------------- single fused encoder kernel (grid = (L,)) ----------------
def _encoder_kernel(emb_ref, bias_ref, eg_ref, eb_ref,
                    wqkv_ref, bqkv_ref, wo_ref, bo_ref, ln1g_ref, ln1b_ref,
                    w1_ref, b1_ref, w2_ref, b2_ref, ln2g_ref, ln2b_ref,
                    poolw_ref, poolb_ref,
                    out_ref, h_ref):
    l = pl.program_id(0)

    # Layer 0: embeddings LayerNorm -> initialize resident hidden state (no zero residual).
    @pl.when(l == 0)
    def _():
        h_ref[...] = _layer_norm(emb_ref[...], eg_ref[...], eb_ref[...])

    h = h_ref[...]                                                     # (B*S, H)

    # Fused QKV projection: one (B*S, H) @ (H, 3H) matmul.
    qkv = jnp.dot(h, wqkv_ref[...], preferred_element_type=jnp.float32) + bqkv_ref[...]
    q = qkv[:, :H]
    k = qkv[:, H:2 * H]
    v = qkv[:, 2 * H:]

    # Multi-head attention without reshapes/transposes:
    # per head, zero out the other heads' columns of q (and v) and do full-width
    # (B*S, H) matmuls; the precomputed additive bias handles batch separation + padding.
    bias = bias_ref[...]                                               # (B*S, B*S)
    col = jax.lax.broadcasted_iota(jnp.int32, (1, H), 1)
    scale = 1.0 / float(HD) ** 0.5
    ctx = jnp.zeros((B * S, H), jnp.float32)
    for hh in range(NH):                                               # static unroll, NH=4
        hm = jnp.where((col >= hh * HD) & (col < (hh + 1) * HD), 1.0, 0.0)
        s = jax.lax.dot_general(q * hm, k, (((1,), (1,)), ((), ())),
                                preferred_element_type=jnp.float32) * scale + bias
        s = s - jnp.max(s, axis=-1, keepdims=True)
        p = jnp.exp(s)
        p = p * pl.reciprocal(jnp.sum(p, axis=-1, keepdims=True), approx=True)
        ctx = ctx + jnp.dot(p, v * hm, preferred_element_type=jnp.float32)

    # Output projection + residual + LN1.
    attn_out = jnp.dot(ctx, wo_ref[...], preferred_element_type=jnp.float32) + bo_ref[...]
    h1 = _layer_norm(attn_out + h, ln1g_ref[...], ln1b_ref[...])

    # FFN (GELU) + residual + LN2.
    ff = _gelu(jnp.dot(h1, w1_ref[...], preferred_element_type=jnp.float32) + b1_ref[...])
    ff = jnp.dot(ff, w2_ref[...], preferred_element_type=jnp.float32) + b2_ref[...]
    h2 = _layer_norm(ff + h1, ln2g_ref[...], ln2b_ref[...])
    h_ref[...] = h2

    # Last layer: BERT pooler on the CLS rows.  CLS rows are picked with a tiny
    # selection matmul (avoids strided row slicing inside the kernel).
    @pl.when(l == pl.num_programs(0) - 1)
    def _():
        row = jax.lax.broadcasted_iota(jnp.int32, (B, B * S), 0)
        colj = jax.lax.broadcasted_iota(jnp.int32, (B, B * S), 1)
        sel = jnp.where(colj == row * S, 1.0, 0.0)                     # (B, B*S)
        cls = jnp.dot(sel, h2, preferred_element_type=jnp.float32)     # (B, H)
        out_ref[...] = jnp.tanh(
            jnp.dot(cls, poolw_ref[...], preferred_element_type=jnp.float32) + poolb_ref[...])


# ---------------- parameter init (deterministic, synthetic, layer-stacked) ----------------
def init_params(key):
    def nrm(k, shape, scale=0.02):
        return scale * jax.random.normal(k, shape, dtype=jnp.float32)

    keys = jax.random.split(key, 8)
    return {
        "word_emb": nrm(keys[0], (V, H)),
        "pos_emb": nrm(keys[1], (MAX_POS, H)),
        "type_emb": nrm(keys[2], (TYPE_VOCAB, H)),
        "emb_ln_g": jnp.ones((1, H), jnp.float32),
        "emb_ln_b": jnp.zeros((1, H), jnp.float32),
        "pool_w": nrm(keys[3], (H, H)),
        "pool_b": jnp.zeros((1, H), jnp.float32),
        # Per-layer weights stacked along a leading L axis -> walked by the grid.
        "wqkv": nrm(keys[4], (L, H, 3 * H)),
        "bqkv": jnp.zeros((L, 1, 3 * H), jnp.float32),
        "wo": nrm(keys[5], (L, H, H)),
        "bo": jnp.zeros((L, 1, H), jnp.float32),
        "ln1_g": jnp.ones((L, 1, H), jnp.float32),
        "ln1_b": jnp.zeros((L, 1, H), jnp.float32),
        "w1": nrm(keys[6], (L, H, I)),
        "b1": jnp.zeros((L, 1, I), jnp.float32),
        "w2": nrm(keys[7], (L, I, H)),
        "b2": jnp.zeros((L, 1, H), jnp.float32),
        "ln2_g": jnp.ones((L, 1, H), jnp.float32),
        "ln2_b": jnp.zeros((L, 1, H), jnp.float32),
    }


# ---------------- forward pass (BERT encoder -> pooler_output) ----------------
def language_encoder_forward(params, token_ids, token_type_ids, attn_mask):
    # Embedding gathers stay in plain JAX (data-dependent gather; tiny).
    we = jnp.take(params["word_emb"], token_ids, axis=0)              # (B,S,H)
    pe = params["pos_emb"][:S][None]                                  # (1,S,H)
    te = jnp.take(params["type_emb"], token_type_ids, axis=0)         # (B,S,H)
    emb = (we + pe + te).reshape(B * S, H).astype(jnp.float32)

    # Additive attention bias, hoisted out of the per-head / per-layer path:
    # 0.0 where (same batch AND key token valid), -1e9 elsewhere.  This encodes both the
    # padding mask and batch block-diagonality so the kernel never reshapes per head/batch.
    batch_id = jnp.arange(B * S, dtype=jnp.int32) // S
    valid = attn_mask.reshape(B * S) > 0.5
    attn_bias = jnp.where(
        (batch_id[:, None] == batch_id[None, :]) & valid[None, :], 0.0, -1e9
    ).astype(jnp.float32)                                             # (B*S, B*S)

    layer_spec = lambda shape: pl.BlockSpec((None,) + shape, lambda l: (l, 0, 0))
    const_spec = lambda shape: pl.BlockSpec(shape, lambda l: (0, 0))

    return pl.pallas_call(
        _encoder_kernel,
        out_shape=jax.ShapeDtypeStruct((B, H), jnp.float32),
        grid_spec=pltpu.PrefetchScalarGridSpec(
            num_scalar_prefetch=0,
            grid=(L,),
            in_specs=[
                const_spec((B * S, H)),       # emb
                const_spec((B * S, B * S)),   # attn_bias
                const_spec((1, H)),           # emb_ln_g
                const_spec((1, H)),           # emb_ln_b
                layer_spec((H, 3 * H)),       # wqkv
                layer_spec((1, 3 * H)),       # bqkv
                layer_spec((H, H)),           # wo
                layer_spec((1, H)),           # bo
                layer_spec((1, H)),           # ln1_g
                layer_spec((1, H)),           # ln1_b
                layer_spec((H, I)),           # w1
                layer_spec((1, I)),           # b1
                layer_spec((I, H)),           # w2
                layer_spec((1, H)),           # b2
                layer_spec((1, H)),           # ln2_g
                layer_spec((1, H)),           # ln2_b
                const_spec((H, H)),           # pool_w
                const_spec((1, H)),           # pool_b
            ],
            out_specs=pl.BlockSpec((B, H), lambda l: (0, 0)),
            scratch_shapes=[pltpu.VMEM((B * S, H), jnp.float32)],     # resident hidden state
        ),
        # The layer axis carries a sequential dependency -> "arbitrary".  (All B*S rows
        # interact through attention, so there is no trivially "parallel" axis for v7x's
        # second TensorCore at this size.)
        compiler_params=pltpu.CompilerParams(dimension_semantics=("arbitrary",)),
    )(emb, attn_bias,
      params["emb_ln_g"], params["emb_ln_b"],
      params["wqkv"], params["bqkv"], params["wo"], params["bo"],
      params["ln1_g"], params["ln1_b"],
      params["w1"], params["b1"], params["w2"], params["b2"],
      params["ln2_g"], params["ln2_b"],
      params["pool_w"], params["pool_b"])


if __name__ == "__main__":
    key = jax.random.PRNGKey(0)
    k_param, k_tok = jax.random.split(key)
    params = init_params(k_param)

    token_ids = jax.random.randint(k_tok, (B, S), 0, V, dtype=jnp.int32)
    token_type_ids = jnp.zeros((B, S), jnp.int32)
    attn_mask = jnp.ones((B, S), jnp.float32)   # padding=True with equal lengths -> no pads

    fwd = jax.jit(language_encoder_forward)
    out = fwd(params, token_ids, token_type_ids, attn_mask)
    jax.block_until_ready(out)
    assert out.shape == (B, H) and out.dtype == jnp.float32
    print("KERNEL_OK")
</pallas_src>

<mosaic_0001>
module attributes {stable_mosaic.version = 11 : i64} {
  func.func @_encoder_kernel(%arg0: i32, %arg1: memref<16x32xf32, #tpu.memory_space<vmem>>, %arg2: memref<16x16xf32, #tpu.memory_space<vmem>>, %arg3: memref<1x32xf32, #tpu.memory_space<vmem>>, %arg4: memref<1x32xf32, #tpu.memory_space<vmem>>, %arg5: memref<1x32x96xf32, #tpu.memory_space<vmem>>, %arg6: memref<1x1x96xf32, #tpu.memory_space<vmem>>, %arg7: memref<1x32x32xf32, #tpu.memory_space<vmem>>, %arg8: memref<1x1x32xf32, #tpu.memory_space<vmem>>, %arg9: memref<1x1x32xf32, #tpu.memory_space<vmem>>, %arg10: memref<1x1x32xf32, #tpu.memory_space<vmem>>, %arg11: memref<1x32x64xf32, #tpu.memory_space<vmem>>, %arg12: memref<1x1x64xf32, #tpu.memory_space<vmem>>, %arg13: memref<1x64x32xf32, #tpu.memory_space<vmem>>, %arg14: memref<1x1x32xf32, #tpu.memory_space<vmem>>, %arg15: memref<1x1x32xf32, #tpu.memory_space<vmem>>, %arg16: memref<1x1x32xf32, #tpu.memory_space<vmem>>, %arg17: memref<32x32xf32, #tpu.memory_space<vmem>>, %arg18: memref<1x32xf32, #tpu.memory_space<vmem>>, %arg19: memref<2x32xf32, #tpu.memory_space<vmem>>, %arg20: memref<16x32xf32, #tpu.memory_space<vmem>>) attributes {dimension_semantics = [#tpu.dimension_semantics<arbitrary>], iteration_bounds = array<i64: 2>, scalar_prefetch = 0 : i64, scratch_operands = 1 : i64, tpu.core_type = #tpu.core_type<tc>, window_params = [{pipeline_mode = #tpu.pipeline_mode<synchronous>, transform_indices = @transform_0, window_bounds = array<i64: 16, 32>}, {pipeline_mode = #tpu.pipeline_mode<synchronous>, transform_indices = @transform_1, window_bounds = array<i64: 16, 16>}, {pipeline_mode = #tpu.pipeline_mode<synchronous>, transform_indices = @transform_2, window_bounds = array<i64: 1, 32>}, {pipeline_mode = #tpu.pipeline_mode<synchronous>, transform_indices = @transform_3, window_bounds = array<i64: 1, 32>}, {transform_indices = @transform_4, window_bounds = array<i64: 1, 32, 96>}, {transform_indices = @transform_5, window_bounds = array<i64: 1, 1, 96>}, {transform_indices = @transform_6, window_bounds = array<i64: 1, 32, 32>}, {transform_indices = @transform_7, window_bounds = array<i64: 1, 1, 32>}, {transform_indices = @transform_8, window_bounds = array<i64: 1, 1, 32>}, {transform_indices = @transform_9, window_bounds = array<i64: 1, 1, 32>}, {transform_indices = @transform_10, window_bounds = array<i64: 1, 32, 64>}, {transform_indices = @transform_11, window_bounds = array<i64: 1, 1, 64>}, {transform_indices = @transform_12, window_bounds = array<i64: 1, 64, 32>}, {transform_indices = @transform_13, window_bounds = array<i64: 1, 1, 32>}, {transform_indices = @transform_14, window_bounds = array<i64: 1, 1, 32>}, {transform_indices = @transform_15, window_bounds = array<i64: 1, 1, 32>}, {pipeline_mode = #tpu.pipeline_mode<synchronous>, transform_indices = @transform_16, window_bounds = array<i64: 32, 32>}, {pipeline_mode = #tpu.pipeline_mode<synchronous>, transform_indices = @transform_17, window_bounds = array<i64: 1, 32>}, {pipeline_mode = #tpu.pipeline_mode<synchronous>, transform_indices = @transform_18, window_bounds = array<i64: 2, 32>}]} {
    %c0_i32 = arith.constant 0 : i32
    %0 = arith.cmpi eq, %arg0, %c0_i32 : i32
    %1 = arith.extui %0 : i1 to i32
    %c0_i32_0 = arith.constant 0 : i32
    %2 = arith.cmpi ne, %1, %c0_i32_0 : i32
    scf.if %2 {
      %c0_93 = arith.constant 0 : index
      %c0_94 = arith.constant 0 : index
      %221 = vector.load %arg1[%c0_93, %c0_94] : memref<16x32xf32, #tpu.memory_space<vmem>>, vector<16x32xf32>
      %c0_95 = arith.constant 0 : index
      %c0_96 = arith.constant 0 : index
      %222 = vector.load %arg3[%c0_95, %c0_96] : memref<1x32xf32, #tpu.memory_space<vmem>>, vector<1x32xf32>
      %c0_97 = arith.constant 0 : index
      %c0_98 = arith.constant 0 : index
      %223 = vector.load %arg4[%c0_97, %c0_98] : memref<1x32xf32, #tpu.memory_space<vmem>>, vector<1x32xf32>
      %cst_99 = arith.constant dense<0.000000e+00> : vector<16xf32>
      %224 = vector.multi_reduction <add>, %221, %cst_99 [1] : vector<16x32xf32> to vector<16xf32>
      %225 = vector.shape_cast %224 : vector<16xf32> to vector<16x1xf32>
      %cst_100 = arith.constant 3.200000e+01 : f32
      %226 = vector.broadcast %cst_100 : f32 to vector<16x1xf32>
      %227 = arith.divf %225, %226 : vector<16x1xf32>
      %228 = vector.broadcast %227 : vector<16x1xf32> to vector<16x32xf32>
      %229 = arith.subf %221, %228 : vector<16x32xf32>
      %230 = arith.mulf %229, %229 : vector<16x32xf32>
      %cst_101 = arith.constant dense<0.000000e+00> : vector<16xf32>
      %231 = vector.multi_reduction <add>, %230, %cst_101 [1] : vector<16x32xf32> to vector<16xf32>
      %232 = vector.shape_cast %231 : vector<16xf32> to vector<16x1xf32>
      %cst_102 = arith.constant 3.200000e+01 : f32
      %233 = vector.broadcast %cst_102 : f32 to vector<16x1xf32>
      %234 = arith.divf %232, %233 : vector<16x1xf32>
      %235 = vector.broadcast %227 : vector<16x1xf32> to vector<16x32xf32>
      %236 = arith.subf %221, %235 : vector<16x32xf32>
      %cst_103 = arith.constant 9.99999996E-13 : f32
      %237 = vector.broadcast %cst_103 : f32 to vector<16x1xf32>
      %238 = arith.addf %234, %237 : vector<16x1xf32>
      %239 = math.rsqrt %238 : vector<16x1xf32>
      %240 = vector.broadcast %239 : vector<16x1xf32> to vector<16x32xf32>
      %241 = arith.mulf %236, %240 : vector<16x32xf32>
      %242 = vector.broadcast %222 : vector<1x32xf32> to vector<16x32xf32>
      %243 = arith.mulf %241, %242 : vector<16x32xf32>
      %244 = vector.broadcast %223 : vector<1x32xf32> to vector<16x32xf32>
      %245 = arith.addf %243, %244 : vector<16x32xf32>
      %c0_104 = arith.constant 0 : index
      %c0_105 = arith.constant 0 : index
      %246 = vector.load %arg20[%c0_104, %c0_105] : memref<16x32xf32, #tpu.memory_space<vmem>>, vector<16x32xf32>
      tpu.vector_store %arg20[%c0_104, %c0_105], %245 {strides = array<i32>} : memref<16x32xf32, #tpu.memory_space<vmem>>, vector<16x32xf32>,
    } else {
    }
    %c0 = arith.constant 0 : index
    %c0_1 = arith.constant 0 : index
    %3 = vector.load %arg20[%c0, %c0_1] : memref<16x32xf32, #tpu.memory_space<vmem>>, vector<16x32xf32>
    %c0_2 = arith.constant 0 : index
    %c0_3 = arith.constant 0 : index
    %c0_4 = arith.constant 0 : index
    %4 = vector.load %arg5[%c0_2, %c0_3, %c0_4] : memref<1x32x96xf32, #tpu.memory_space<vmem>>, vector<1x32x96xf32>
    %5 = vector.shape_cast %4 : vector<1x32x96xf32> to vector<32x96xf32>
    %cst = arith.constant dense<0.000000e+00> : vector<16x96xf32>
    %6 = tpu.matmul %3, %5, %cst {dimension_numbers = #tpu.dot_dimension_numbers<[1], [0], [0], [1], [0, 0, 1, 1], [], []>} : vector<16x32xf32>, vector<32x96xf32>, vector<16x96xf32> -> vector<16x96xf32>
    %c0_5 = arith.constant 0 : index
    %c0_6 = arith.constant 0 : index
    %c0_7 = arith.constant 0 : index
    %7 = vector.load %arg6[%c0_5, %c0_6, %c0_7] : memref<1x1x96xf32, #tpu.memory_space<vmem>>, vector<1x1x96xf32>
    %8 = vector.shape_cast %7 : vector<1x1x96xf32> to vector<1x96xf32>
    %9 = vector.broadcast %8 : vector<1x96xf32> to vector<16x96xf32>
    %10 = arith.addf %6, %9 : vector<16x96xf32>
    %11 = vector.extract_strided_slice %10 {offsets = [0, 0], sizes = [16, 32], strides = [1, 1]} : vector<16x96xf32> to vector<16x32xf32>
    %12 = vector.extract_strided_slice %10 {offsets = [0, 32], sizes = [16, 32], strides = [1, 1]} : vector<16x96xf32> to vector<16x32xf32>
    %13 = vector.extract_strided_slice %10 {offsets = [0, 64], sizes = [16, 32], strides = [1, 1]} : vector<16x96xf32> to vector<16x32xf32>
    %c0_8 = arith.constant 0 : index
    %c0_9 = arith.constant 0 : index
    %14 = vector.load %arg2[%c0_8, %c0_9] : memref<16x16xf32, #tpu.memory_space<vmem>>, vector<16x16xf32>
    %15 = tpu.iota {dimensions = array<i32: 1>} : vector<1x32xi32>
    %cst_10 = arith.constant 0.000000e+00 : f32
    %16 = vector.broadcast %cst_10 : f32 to vector<16x32xf32>
    %c0_i32_11 = arith.constant 0 : i32
    %17 = vector.broadcast %c0_i32_11 : i32 to vector<1x32xi32>
    %18 = arith.cmpi sge, %15, %17 : vector<1x32xi32>
    %c8_i32 = arith.constant 8 : i32
    %19 = vector.broadcast %c8_i32 : i32 to vector<1x32xi32>
    %20 = arith.cmpi slt, %15, %19 : vector<1x32xi32>
    %21 = arith.andi %18, %20 : vector<1x32xi1>
    %cst_12 = arith.constant 1.000000e+00 : f32
    %cst_13 = arith.constant 0.000000e+00 : f32
    %22 = vector.broadcast %cst_12 : f32 to vector<1x32xf32>
    %23 = vector.broadcast %cst_13 : f32 to vector<1x32xf32>
    %24 = arith.select %21, %22, %23 : vector<1x32xi1>, vector<1x32xf32>
    %25 = vector.broadcast %24 : vector<1x32xf32> to vector<16x32xf32>
    %26 = arith.mulf %11, %25 : vector<16x32xf32>
    %cst_14 = arith.constant dense<0.000000e+00> : vector<16x16xf32>
    %27 = tpu.matmul %26, %12, %cst_14 {dimension_numbers = #tpu.dot_dimension_numbers<[1], [1], [0], [0], [0, 0, 1, 0], [], []>} : vector<16x32xf32>, vector<16x32xf32>, vector<16x16xf32> -> vector<16x16xf32>
    %cst_15 = arith.constant 0.353553385 : f32
    %28 = vector.broadcast %cst_15 : f32 to vector<16x16xf32>
    %29 = arith.mulf %27, %28 : vector<16x16xf32>
    %30 = arith.addf %29, %14 : vector<16x16xf32>
    %cst_16 = arith.constant dense<0xFF800000> : vector<16xf32>
    %31 = vector.multi_reduction <maximumf>, %30, %cst_16 [1] : vector<16x16xf32> to vector<16xf32>
    %32 = vector.shape_cast %31 : vector<16xf32> to vector<16x1xf32>
    %33 = vector.broadcast %32 : vector<16x1xf32> to vector<16x16xf32>
    %34 = arith.subf %30, %33 : vector<16x16xf32>
    %35 = math.exp %34 : vector<16x16xf32>
    %cst_17 = arith.constant dense<0.000000e+00> : vector<16xf32>
    %36 = vector.multi_reduction <add>, %35, %cst_17 [1] : vector<16x16xf32> to vector<16xf32>
    %37 = vector.shape_cast %36 : vector<16xf32> to vector<16x1xf32>
    %38 = tpu.reciprocal %37 {approx = true} : vector<16x1xf32> -> vector<16x1xf32>
    %39 = vector.broadcast %38 : vector<16x1xf32> to vector<16x16xf32>
    %40 = arith.mulf %35, %39 : vector<16x16xf32>
    %41 = vector.broadcast %24 : vector<1x32xf32> to vector<16x32xf32>
    %42 = arith.mulf %13, %41 : vector<16x32xf32>
    %cst_18 = arith.constant dense<0.000000e+00> : vector<16x32xf32>
    %43 = tpu.matmul %40, %42, %cst_18 {dimension_numbers = #tpu.dot_dimension_numbers<[1], [0], [0], [1], [0, 0, 1, 1], [], []>} : vector<16x16xf32>, vector<16x32xf32>, vector<16x32xf32> -> vector<16x32xf32>
    %44 = arith.addf %16, %43 : vector<16x32xf32>
    %c8_i32_19 = arith.constant 8 : i32
    %45 = vector.broadcast %c8_i32_19 : i32 to vector<1x32xi32>
    %46 = arith.cmpi sge, %15, %45 : vector<1x32xi32>
    %c16_i32 = arith.constant 16 : i32
    %47 = vector.broadcast %c16_i32 : i32 to vector<1x32xi32>
    %48 = arith.cmpi slt, %15, %47 : vector<1x32xi32>
    %49 = arith.andi %46, %48 : vector<1x32xi1>
    %cst_20 = arith.constant 1.000000e+00 : f32
    %cst_21 = arith.constant 0.000000e+00 : f32
    %50 = vector.broadcast %cst_20 : f32 to vector<1x32xf32>
    %51 = vector.broadcast %cst_21 : f32 to vector<1x32xf32>
    %52 = arith.select %49, %50, %51 : vector<1x32xi1>, vector<1x32xf32>
    %53 = vector.broadcast %52 : vector<1x32xf32> to vector<16x32xf32>
    %54 = arith.mulf %11, %53 : vector<16x32xf32>
    %cst_22 = arith.constant dense<0.000000e+00> : vector<16x16xf32>
    %55 = tpu.matmul %54, %12, %cst_22 {dimension_numbers = #tpu.dot_dimension_numbers<[1], [1], [0], [0], [0, 0, 1, 0], [], []>} : vector<16x32xf32>, vector<16x32xf32>, vector<16x16xf32> -> vector<16x16xf32>
    %cst_23 = arith.constant 0.353553385 : f32
    %56 = vector.broadcast %cst_23 : f32 to vector<16x16xf32>
    %57 = arith.mulf %55, %56 : vector<16x16xf32>
    %58 = arith.addf %57, %14 : vector<16x16xf32>
    %cst_24 = arith.constant dense<0xFF800000> : vector<16xf32>
    %59 = vector.multi_reduction <maximumf>, %58, %cst_24 [1] : vector<16x16xf32> to vector<16xf32>
    %60 = vector.shape_cast %59 : vector<16xf32> to vector<16x1xf32>
    %61 = vector.broadcast %60 : vector<16x1xf32> to vector<16x16xf32>
    %62 = arith.subf %58, %61 : vector<16x16xf32>
    %63 = math.exp %62 : vector<16x16xf32>
    %cst_25 = arith.constant dense<0.000000e+00> : vector<16xf32>
    %64 = vector.multi_reduction <add>, %63, %cst_25 [1] : vector<16x16xf32> to vector<16xf32>
    %65 = vector.shape_cast %64 : vector<16xf32> to vector<16x1xf32>
    %66 = tpu.reciprocal %65 {approx = true} : vector<16x1xf32> -> vector<16x1xf32>
    %67 = vector.broadcast %66 : vector<16x1xf32> to vector<16x16xf32>
    %68 = arith.mulf %63, %67 : vector<16x16xf32>
    %69 = vector.broadcast %52 : vector<1x32xf32> to vector<16x32xf32>
    %70 = arith.mulf %13, %69 : vector<16x32xf32>
    %cst_26 = arith.constant dense<0.000000e+00> : vector<16x32xf32>
    %71 = tpu.matmul %68, %70, %cst_26 {dimension_numbers = #tpu.dot_dimension_numbers<[1], [0], [0], [1], [0, 0, 1, 1], [], []>} : vector<16x16xf32>, vector<16x32xf32>, vector<16x32xf32> -> vector<16x32xf32>
    %72 = arith.addf %44, %71 : vector<16x32xf32>
    %c16_i32_27 = arith.constant 16 : i32
    %73 = vector.broadcast %c16_i32_27 : i32 to vector<1x32xi32>
    %74 = arith.cmpi sge, %15, %73 : vector<1x32xi32>
    %c24_i32 = arith.constant 24 : i32
    %75 = vector.broadcast %c24_i32 : i32 to vector<1x32xi32>
    %76 = arith.cmpi slt, %15, %75 : vector<1x32xi32>
    %77 = arith.andi %74, %76 : vector<1x32xi1>
    %cst_28 = arith.constant 1.000000e+00 : f32
    %cst_29 = arith.constant 0.000000e+00 : f32
    %78 = vector.broadcast %cst_28 : f32 to vector<1x32xf32>
    %79 = vector.broadcast %cst_29 : f32 to vector<1x32xf32>
    %80 = arith.select %77, %78, %79 : vector<1x32xi1>, vector<1x32xf32>
    %81 = vector.broadcast %80 : vector<1x32xf32> to vector<16x32xf32>
    %82 = arith.mulf %11, %81 : vector<16x32xf32>
    %cst_30 = arith.constant dense<0.000000e+00> : vector<16x16xf32>
    %83 = tpu.matmul %82, %12, %cst_30 {dimension_numbers = #tpu.dot_dimension_numbers<[1], [1], [0], [0], [0, 0, 1, 0], [], []>} : vector<16x32xf32>, vector<16x32xf32>, vector<16x16xf32> -> vector<16x16xf32>
    %cst_31 = arith.constant 0.353553385 : f32
    %84 = vector.broadcast %cst_31 : f32 to vector<16x16xf32>
    %85 = arith.mulf %83, %84 : vector<16x16xf32>
    %86 = arith.addf %85, %14 : vector<16x16xf32>
    %cst_32 = arith.constant dense<0xFF800000> : vector<16xf32>
    %87 = vector.multi_reduction <maximumf>, %86, %cst_32 [1] : vector<16x16xf32> to vector<16xf32>
    %88 = vector.shape_cast %87 : vector<16xf32> to vector<16x1xf32>
    %89 = vector.broadcast %88 : vector<16x1xf32> to vector<16x16xf32>
    %90 = arith.subf %86, %89 : vector<16x16xf32>
    %91 = math.exp %90 : vector<16x16xf32>
    %cst_33 = arith.constant dense<0.000000e+00> : vector<16xf32>
    %92 = vector.multi_reduction <add>, %91, %cst_33 [1] : vector<16x16xf32> to vector<16xf32>
    %93 = vector.shape_cast %92 : vector<16xf32> to vector<16x1xf32>
    %94 = tpu.reciprocal %93 {approx = true} : vector<16x1xf32> -> vector<16x1xf32>
    %95 = vector.broadcast %94 : vector<16x1xf32> to vector<16x16xf32>
    %96 = arith.mulf %91, %95 : vector<16x16xf32>
    %97 = vector.broadcast %80 : vector<1x32xf32> to vector<16x32xf32>
    %98 = arith.mulf %13, %97 : vector<16x32xf32>
    %cst_34 = arith.constant dense<0.000000e+00> : vector<16x32xf32>
    %99 = tpu.matmul %96, %98, %cst_34 {dimension_numbers = #tpu.dot_dimension_numbers<[1], [0], [0], [1], [0, 0, 1, 1], [], []>} : vector<16x16xf32>, vector<16x32xf32>, vector<16x32xf32> -> vector<16x32xf32>
    %100 = arith.addf %72, %99 : vector<16x32xf32>
    %c24_i32_35 = arith.constant 24 : i32
    %101 = vector.broadcast %c24_i32_35 : i32 to vector<1x32xi32>
    %102 = arith.cmpi sge, %15, %101 : vector<1x32xi32>
    %c32_i32 = arith.constant 32 : i32
    %103 = vector.broadcast %c32_i32 : i32 to vector<1x32xi32>
    %104 = arith.cmpi slt, %15, %103 : vector<1x32xi32>
    %105 = arith.andi %102, %104 : vector<1x32xi1>
    %cst_36 = arith.constant 1.000000e+00 : f32
    %cst_37 = arith.constant 0.000000e+00 : f32
    %106 = vector.broadcast %cst_36 : f32 to vector<1x32xf32>
    %107 = vector.broadcast %cst_37 : f32 to vector<1x32xf32>
    %108 = arith.select %105, %106, %107 : vector<1x32xi1>, vector<1x32xf32>
    %109 = vector.broadcast %108 : vector<1x32xf32> to vector<16x32xf32>
    %110 = arith.mulf %11, %109 : vector<16x32xf32>
    %cst_38 = arith.constant dense<0.000000e+00> : vector<16x16xf32>
    %111 = tpu.matmul %110, %12, %cst_38 {dimension_numbers = #tpu.dot_dimension_numbers<[1], [1], [0], [0], [0, 0, 1, 0], [], []>} : vector<16x32xf32>, vector<16x32xf32>, vector<16x16xf32> -> vector<16x16xf32>
    %cst_39 = arith.constant 0.353553385 : f32
    %112 = vector.broadcast %cst_39 : f32 to vector<16x16xf32>
    %113 = arith.mulf %111, %112 : vector<16x16xf32>
    %114 = arith.addf %113, %14 : vector<16x16xf32>
    %cst_40 = arith.constant dense<0xFF800000> : vector<16xf32>
    %115 = vector.multi_reduction <maximumf>, %114, %cst_40 [1] : vector<16x16xf32> to vector<16xf32>
    %116 = vector.shape_cast %115 : vector<16xf32> to vector<16x1xf32>
    %117 = vector.broadcast %116 : vector<16x1xf32> to vector<16x16xf32>
    %118 = arith.subf %114, %117 : vector<16x16xf32>
    %119 = math.exp %118 : vector<16x16xf32>
    %cst_41 = arith.constant dense<0.000000e+00> : vector<16xf32>
    %120 = vector.multi_reduction <add>, %119, %cst_41 [1] : vector<16x16xf32> to vector<16xf32>
    %121 = vector.shape_cast %120 : vector<16xf32> to vector<16x1xf32>
    %122 = tpu.reciprocal %121 {approx = true} : vector<16x1xf32> -> vector<16x1xf32>
    %123 = vector.broadcast %122 : vector<16x1xf32> to vector<16x16xf32>
    %124 = arith.mulf %119, %123 : vector<16x16xf32>
    %125 = vector.broadcast %108 : vector<1x32xf32> to vector<16x32xf32>
    %126 = arith.mulf %13, %125 : vector<16x32xf32>
    %cst_42 = arith.constant dense<0.000000e+00> : vector<16x32xf32>
    %127 = tpu.matmul %124, %126, %cst_42 {dimension_numbers = #tpu.dot_dimension_numbers<[1], [0], [0], [1], [0, 0, 1, 1], [], []>} : vector<16x16xf32>, vector<16x32xf32>, vector<16x32xf32> -> vector<16x32xf32>
    %128 = arith.addf %100, %127 : vector<16x32xf32>
    %c0_43 = arith.constant 0 : index
    %c0_44 = arith.constant 0 : index
    %c0_45 = arith.constant 0 : index
    %129 = vector.load %arg7[%c0_43, %c0_44, %c0_45] : memref<1x32x32xf32, #tpu.memory_space<vmem>>, vector<1x32x32xf32>
    %130 = vector.shape_cast %129 : vector<1x32x32xf32> to vector<32x32xf32>
    %cst_46 = arith.constant dense<0.000000e+00> : vector<16x32xf32>
    %131 = tpu.matmul %128, %130, %cst_46 {dimension_numbers = #tpu.dot_dimension_numbers<[1], [0], [0], [1], [0, 0, 1, 1], [], []>} : vector<16x32xf32>, vector<32x32xf32>, vector<16x32xf32> -> vector<16x32xf32>
    %c0_47 = arith.constant 0 : index
    %c0_48 = arith.constant 0 : index
    %c0_49 = arith.constant 0 : index
    %132 = vector.load %arg8[%c0_47, %c0_48, %c0_49] : memref<1x1x32xf32, #tpu.memory_space<vmem>>, vector<1x1x32xf32>
    %133 = vector.shape_cast %132 : vector<1x1x32xf32> to vector<1x32xf32>
    %134 = vector.broadcast %133 : vector<1x32xf32> to vector<16x32xf32>
    %135 = arith.addf %131, %134 : vector<16x32xf32>
    %136 = arith.addf %135, %3 : vector<16x32xf32>
    %c0_50 = arith.constant 0 : index
    %c0_51 = arith.constant 0 : index
    %c0_52 = arith.constant 0 : index
    %137 = vector.load %arg9[%c0_50, %c0_51, %c0_52] : memref<1x1x32xf32, #tpu.memory_space<vmem>>, vector<1x1x32xf32>
    %138 = vector.shape_cast %137 : vector<1x1x32xf32> to vector<1x32xf32>
    %c0_53 = arith.constant 0 : index
    %c0_54 = arith.constant 0 : index
    %c0_55 = arith.constant 0 : index
    %139 = vector.load %arg10[%c0_53, %c0_54, %c0_55] : memref<1x1x32xf32, #tpu.memory_space<vmem>>, vector<1x1x32xf32>
    %140 = vector.shape_cast %139 : vector<1x1x32xf32> to vector<1x32xf32>
    %cst_56 = arith.constant dense<0.000000e+00> : vector<16xf32>
    %141 = vector.multi_reduction <add>, %136, %cst_56 [1] : vector<16x32xf32> to vector<16xf32>
    %142 = vector.shape_cast %141 : vector<16xf32> to vector<16x1xf32>
    %cst_57 = arith.constant 3.200000e+01 : f32
    %143 = vector.broadcast %cst_57 : f32 to vector<16x1xf32>
    %144 = arith.divf %142, %143 : vector<16x1xf32>
    %145 = vector.broadcast %144 : vector<16x1xf32> to vector<16x32xf32>
    %146 = arith.subf %136, %145 : vector<16x32xf32>
    %147 = arith.mulf %146, %146 : vector<16x32xf32>
    %cst_58 = arith.constant dense<0.000000e+00> : vector<16xf32>
    %148 = vector.multi_reduction <add>, %147, %cst_58 [1] : vector<16x32xf32> to vector<16xf32>
    %149 = vector.shape_cast %148 : vector<16xf32> to vector<16x1xf32>
    %cst_59 = arith.constant 3.200000e+01 : f32
    %150 = vector.broadcast %cst_59 : f32 to vector<16x1xf32>
    %151 = arith.divf %149, %150 : vector<16x1xf32>
    %152 = vector.broadcast %144 : vector<16x1xf32> to vector<16x32xf32>
    %153 = arith.subf %136, %152 : vector<16x32xf32>
    %cst_60 = arith.constant 9.99999996E-13 : f32
    %154 = vector.broadcast %cst_60 : f32 to vector<16x1xf32>
    %155 = arith.addf %151, %154 : vector<16x1xf32>
    %156 = math.rsqrt %155 : vector<16x1xf32>
    %157 = vector.broadcast %156 : vector<16x1xf32> to vector<16x32xf32>
    %158 = arith.mulf %153, %157 : vector<16x32xf32>
    %159 = vector.broadcast %138 : vector<1x32xf32> to vector<16x32xf32>
    %160 = arith.mulf %158, %159 : vector<16x32xf32>
    %161 = vector.broadcast %140 : vector<1x32xf32> to vector<16x32xf32>
    %162 = arith.addf %160, %161 : vector<16x32xf32>
    %c0_61 = arith.constant 0 : index
    %c0_62 = arith.constant 0 : index
    %c0_63 = arith.constant 0 : index
    %163 = vector.load %arg11[%c0_61, %c0_62, %c0_63] : memref<1x32x64xf32, #tpu.memory_space<vmem>>, vector<1x32x64xf32>
    %164 = vector.shape_cast %163 : vector<1x32x64xf32> to vector<32x64xf32>
    %cst_64 = arith.constant dense<0.000000e+00> : vector<16x64xf32>
    %165 = tpu.matmul %162, %164, %cst_64 {dimension_numbers = #tpu.dot_dimension_numbers<[1], [0], [0], [1], [0, 0, 1, 1], [], []>} : vector<16x32xf32>, vector<32x64xf32>, vector<16x64xf32> -> vector<16x64xf32>
    %c0_65 = arith.constant 0 : index
    %c0_66 = arith.constant 0 : index
    %c0_67 = arith.constant 0 : index
    %166 = vector.load %arg12[%c0_65, %c0_66, %c0_67] : memref<1x1x64xf32, #tpu.memory_space<vmem>>, vector<1x1x64xf32>
    %167 = vector.shape_cast %166 : vector<1x1x64xf32> to vector<1x64xf32>
    %168 = vector.broadcast %167 : vector<1x64xf32> to vector<16x64xf32>
    %169 = arith.addf %165, %168 : vector<16x64xf32>
    %cst_68 = arith.constant 5.000000e-01 : f32
    %170 = vector.broadcast %cst_68 : f32 to vector<16x64xf32>
    %171 = arith.mulf %170, %169 : vector<16x64xf32>
    %cst_69 = arith.constant 4.471500e-02 : f32
    %172 = vector.broadcast %cst_69 : f32 to vector<16x64xf32>
    %173 = arith.mulf %172, %169 : vector<16x64xf32>
    %174 = arith.mulf %173, %169 : vector<16x64xf32>
    %175 = arith.mulf %174, %169 : vector<16x64xf32>
    %176 = arith.addf %169, %175 : vector<16x64xf32>
    %cst_70 = arith.constant 0.797884583 : f32
    %177 = vector.broadcast %cst_70 : f32 to vector<16x64xf32>
    %178 = arith.mulf %177, %176 : vector<16x64xf32>
    %179 = math.tanh %178 : vector<16x64xf32>
    %cst_71 = arith.constant 1.000000e+00 : f32
    %180 = vector.broadcast %cst_71 : f32 to vector<16x64xf32>
    %181 = arith.addf %180, %179 : vector<16x64xf32>
    %182 = arith.mulf %171, %181 : vector<16x64xf32>
    %c0_72 = arith.constant 0 : index
    %c0_73 = arith.constant 0 : index
    %c0_74 = arith.constant 0 : index
    %183 = vector.load %arg13[%c0_72, %c0_73, %c0_74] : memref<1x64x32xf32, #tpu.memory_space<vmem>>, vector<1x64x32xf32>
    %184 = vector.shape_cast %183 : vector<1x64x32xf32> to vector<64x32xf32>
    %cst_75 = arith.constant dense<0.000000e+00> : vector<16x32xf32>
    %185 = tpu.matmul %182, %184, %cst_75 {dimension_numbers = #tpu.dot_dimension_numbers<[1], [0], [0], [1], [0, 0, 1, 1], [], []>} : vector<16x64xf32>, vector<64x32xf32>, vector<16x32xf32> -> vector<16x32xf32>
    %c0_76 = arith.constant 0 : index
    %c0_77 = arith.constant 0 : index
    %c0_78 = arith.constant 0 : index
    %186 = vector.load %arg14[%c0_76, %c0_77, %c0_78] : memref<1x1x32xf32, #tpu.memory_space<vmem>>, vector<1x1x32xf32>
    %187 = vector.shape_cast %186 : vector<1x1x32xf32> to vector<1x32xf32>
    %188 = vector.broadcast %187 : vector<1x32xf32> to vector<16x32xf32>
    %189 = arith.addf %185, %188 : vector<16x32xf32>
    %190 = arith.addf %189, %162 : vector<16x32xf32>
    %c0_79 = arith.constant 0 : index
    %c0_80 = arith.constant 0 : index
    %c0_81 = arith.constant 0 : index
    %191 = vector.load %arg15[%c0_79, %c0_80, %c0_81] : memref<1x1x32xf32, #tpu.memory_space<vmem>>, vector<1x1x32xf32>
    %192 = vector.shape_cast %191 : vector<1x1x32xf32> to vector<1x32xf32>
    %c0_82 = arith.constant 0 : index
    %c0_83 = arith.constant 0 : index
    %c0_84 = arith.constant 0 : index
    %193 = vector.load %arg16[%c0_82, %c0_83, %c0_84] : memref<1x1x32xf32, #tpu.memory_space<vmem>>, vector<1x1x32xf32>
    %194 = vector.shape_cast %193 : vector<1x1x32xf32> to vector<1x32xf32>
    %cst_85 = arith.constant dense<0.000000e+00> : vector<16xf32>
    %195 = vector.multi_reduction <add>, %190, %cst_85 [1] : vector<16x32xf32> to vector<16xf32>
    %196 = vector.shape_cast %195 : vector<16xf32> to vector<16x1xf32>
    %cst_86 = arith.constant 3.200000e+01 : f32
    %197 = vector.broadcast %cst_86 : f32 to vector<16x1xf32>
    %198 = arith.divf %196, %197 : vector<16x1xf32>
    %199 = vector.broadcast %198 : vector<16x1xf32> to vector<16x32xf32>
    %200 = arith.subf %190, %199 : vector<16x32xf32>
    %201 = arith.mulf %200, %200 : vector<16x32xf32>
    %cst_87 = arith.constant dense<0.000000e+00> : vector<16xf32>
    %202 = vector.multi_reduction <add>, %201, %cst_87 [1] : vector<16x32xf32> to vector<16xf32>
    %203 = vector.shape_cast %202 : vector<16xf32> to vector<16x1xf32>
    %cst_88 = arith.constant 3.200000e+01 : f32
    %204 = vector.broadcast %cst_88 : f32 to vector<16x1xf32>
    %205 = arith.divf %203, %204 : vector<16x1xf32>
    %206 = vector.broadcast %198 : vector<16x1xf32> to vector<16x32xf32>
    %207 = arith.subf %190, %206 : vector<16x32xf32>
    %cst_89 = arith.constant 9.99999996E-13 : f32
    %208 = vector.broadcast %cst_89 : f32 to vector<16x1xf32>
    %209 = arith.addf %205, %208 : vector<16x1xf32>
    %210 = math.rsqrt %209 : vector<16x1xf32>
    %211 = vector.broadcast %210 : vector<16x1xf32> to vector<16x32xf32>
    %212 = arith.mulf %207, %211 : vector<16x32xf32>
    %213 = vector.broadcast %192 : vector<1x32xf32> to vector<16x32xf32>
    %214 = arith.mulf %212, %213 : vector<16x32xf32>
    %215 = vector.broadcast %194 : vector<1x32xf32> to vector<16x32xf32>
    %216 = arith.addf %214, %215 : vector<16x32xf32>
    %c0_90 = arith.constant 0 : index
    %c0_91 = arith.constant 0 : index
    %217 = vector.load %arg20[%c0_90, %c0_91] : memref<16x32xf32, #tpu.memory_space<vmem>>, vector<16x32xf32>
    tpu.vector_store %arg20[%c0_90, %c0_91], %216 {strides = array<i32>} : memref<16x32xf32, #tpu.memory_space<vmem>>, vector<16x32xf32>,
    %c1_i32 = arith.constant 1 : i32
    %218 = arith.cmpi eq, %arg0, %c1_i32 : i32
    %219 = arith.extui %218 : i1 to i32
    %c0_i32_92 = arith.constant 0 : i32
    %220 = arith.cmpi ne, %219, %c0_i32_92 : i32
    scf.if %220 {
      %221 = tpu.iota {dimensions = array<i32: 0>} : vector<2x16xi32>
      %222 = tpu.iota {dimensions = array<i32: 1>} : vector<2x16xi32>
      %c8_i32_93 = arith.constant 8 : i32
      %223 = vector.broadcast %c8_i32_93 : i32 to vector<2x16xi32>
      %224 = arith.muli %221, %223 : vector<2x16xi32>
      %225 = arith.cmpi eq, %222, %224 : vector<2x16xi32>
      %cst_94 = arith.constant 1.000000e+00 : f32
      %cst_95 = arith.constant 0.000000e+00 : f32
      %226 = vector.broadcast %cst_94 : f32 to vector<2x16xf32>
      %227 = vector.broadcast %cst_95 : f32 to vector<2x16xf32>
      %228 = arith.select %225, %226, %227 : vector<2x16xi1>, vector<2x16xf32>
      %cst_96 = arith.constant dense<0.000000e+00> : vector<2x32xf32>
      %229 = tpu.matmul %228, %216, %cst_96 {dimension_numbers = #tpu.dot_dimension_numbers<[1], [0], [0], [1], [0, 0, 1, 1], [], []>} : vector<2x16xf32>, vector<16x32xf32>, vector<2x32xf32> -> vector<2x32xf32>
      %c0_97 = arith.constant 0 : index
      %c0_98 = arith.constant 0 : index
      %230 = vector.load %arg17[%c0_97, %c0_98] : memref<32x32xf32, #tpu.memory_space<vmem>>, vector<32x32xf32>
      %cst_99 = arith.constant dense<0.000000e+00> : vector<2x32xf32>
      %231 = tpu.matmul %229, %230, %cst_99 {dimension_numbers = #tpu.dot_dimension_numbers<[1], [0], [0], [1], [0, 0, 1, 1], [], []>} : vector<2x32xf32>, vector<32x32xf32>, vector<2x32xf32> -> vector<2x32xf32>
      %c0_100 = arith.constant 0 : index
      %c0_101 = arith.constant 0 : index
      %232 = vector.load %arg18[%c0_100, %c0_101] : memref<1x32xf32, #tpu.memory_space<vmem>>, vector<1x32xf32>
      %233 = vector.broadcast %232 : vector<1x32xf32> to vector<2x32xf32>
      %234 = arith.addf %231, %233 : vector<2x32xf32>
      %235 = math.tanh %234 : vector<2x32xf32>
      %c0_102 = arith.constant 0 : index
      %c0_103 = arith.constant 0 : index
      %236 = vector.load %arg19[%c0_102, %c0_103] : memref<2x32xf32, #tpu.memory_space<vmem>>, vector<2x32xf32>
      tpu.vector_store %arg19[%c0_102, %c0_103], %235 {strides = array<i32>} : memref<2x32xf32, #tpu.memory_space<vmem>>, vector<2x32xf32>,
    } else {
    }
    return
  }
  func.func @transform_0(%arg0: i32) -> (i32, i32) {
    %c0_i32 = arith.constant 0 : i32
    %c0_i32_0 = arith.constant 0 : i32
    %c0_i32_1 = arith.constant 0 : i32
    return %c0_i32, %c0_i32_0 : i32, i32
  }
  func.func @transform_1(%arg0: i32) -> (i32, i32) {
    %c0_i32 = arith.constant 0 : i32
    %c0_i32_0 = arith.constant 0 : i32
    %c0_i32_1 = arith.constant 0 : i32
    return %c0_i32, %c0_i32_0 : i32, i32
  }
  func.func @transform_2(%arg0: i32) -> (i32, i32) {
    %c0_i32 = arith.constant 0 : i32
    %c0_i32_0 = arith.constant 0 : i32
    %c0_i32_1 = arith.constant 0 : i32
    return %c0_i32, %c0_i32_0 : i32, i32
  }
  func.func @transform_3(%arg0: i32) -> (i32, i32) {
    %c0_i32 = arith.constant 0 : i32
    %c0_i32_0 = arith.constant 0 : i32
    %c0_i32_1 = arith.constant 0 : i32
    return %c0_i32, %c0_i32_0 : i32, i32
  }
  func.func @transform_4(%arg0: i32) -> (i32, i32, i32) {
    %c0_i32 = arith.constant 0 : i32
    %c0_i32_0 = arith.constant 0 : i32
    %c0_i32_1 = arith.constant 0 : i32
    return %arg0, %c0_i32, %c0_i32_0 : i32, i32, i32
  }
  func.func @transform_5(%arg0: i32) -> (i32, i32, i32) {
    %c0_i32 = arith.constant 0 : i32
    %c0_i32_0 = arith.constant 0 : i32
    %c0_i32_1 = arith.constant 0 : i32
    return %arg0, %c0_i32, %c0_i32_0 : i32, i32, i32
  }
  func.func @transform_6(%arg0: i32) -> (i32, i32, i32) {
    %c0_i32 = arith.constant 0 : i32
    %c0_i32_0 = arith.constant 0 : i32
    %c0_i32_1 = arith.constant 0 : i32
    return %arg0, %c0_i32, %c0_i32_0 : i32, i32, i32
  }
  func.func @transform_7(%arg0: i32) -> (i32, i32, i32) {
    %c0_i32 = arith.constant 0 : i32
    %c0_i32_0 = arith.constant 0 : i32
    %c0_i32_1 = arith.constant 0 : i32
    return %arg0, %c0_i32, %c0_i32_0 : i32, i32, i32
  }
  func.func @transform_8(%arg0: i32) -> (i32, i32, i32) {
    %c0_i32 = arith.constant 0 : i32
    %c0_i32_0 = arith.constant 0 : i32
    %c0_i32_1 = arith.constant 0 : i32
    return %arg0, %c0_i32, %c0_i32_0 : i32, i32, i32
  }
  func.func @transform_9(%arg0: i32) -> (i32, i32, i32) {
    %c0_i32 = arith.constant 0 : i32
    %c0_i32_0 = arith.constant 0 : i32
    %c0_i32_1 = arith.constant 0 : i32
    return %arg0, %c0_i32, %c0_i32_0 : i32, i32, i32
  }
  func.func @transform_10(%arg0: i32) -> (i32, i32, i32) {
    %c0_i32 = arith.constant 0 : i32
    %c0_i32_0 = arith.constant 0 : i32
    %c0_i32_1 = arith.constant 0 : i32
    return %arg0, %c0_i32, %c0_i32_0 : i32, i32, i32
  }
  func.func @transform_11(%arg0: i32) -> (i32, i32, i32) {
    %c0_i32 = arith.constant 0 : i32
    %c0_i32_0 = arith.constant 0 : i32
    %c0_i32_1 = arith.constant 0 : i32
    return %arg0, %c0_i32, %c0_i32_0 : i32, i32, i32
  }
  func.func @transform_12(%arg0: i32) -> (i32, i32, i32) {
    %c0_i32 = arith.constant 0 : i32
    %c0_i32_0 = arith.constant 0 : i32
    %c0_i32_1 = arith.constant 0 : i32
    return %arg0, %c0_i32, %c0_i32_0 : i32, i32, i32
  }
  func.func @transform_13(%arg0: i32) -> (i32, i32, i32) {
    %c0_i32 = arith.constant 0 : i32
    %c0_i32_0 = arith.constant 0 : i32
    %c0_i32_1 = arith.constant 0 : i32
    return %arg0, %c0_i32, %c0_i32_0 : i32, i32, i32
  }
  func.func @transform_14(%arg0: i32) -> (i32, i32, i32) {
    %c0_i32 = arith.constant 0 : i32
    %c0_i32_0 = arith.constant 0 : i32
    %c0_i32_1 = arith.constant 0 : i32
    return %arg0, %c0_i32, %c0_i32_0 : i32, i32, i32
  }
  func.func @transform_15(%arg0: i32) -> (i32, i32, i32) {
    %c0_i32 = arith.constant 0 : i32
    %c0_i32_0 = arith.constant 0 : i32
    %c0_i32_1 = arith.constant 0 : i32
    return %arg0, %c0_i32, %c0_i32_0 : i32, i32, i32
  }
  func.func @transform_16(%arg0: i32) -> (i32, i32) {
    %c0_i32 = arith.constant 0 : i32
    %c0_i32_0 = arith.constant 0 : i32
    %c0_i32_1 = arith.constant 0 : i32
    return %c0_i32, %c0_i32_0 : i32, i32
  }
  func.func @transform_17(%arg0: i32) -> (i32, i32) {
    %c0_i32 = arith.constant 0 : i32
    %c0_i32_0 = arith.constant 0 : i32
    %c0_i32_1 = arith.constant 0 : i32
    return %c0_i32, %c0_i32_0 : i32, i32
  }
  func.func @transform_18(%arg0: i32) -> (i32, i32) {
    %c0_i32 = arith.constant 0 : i32
    %c0_i32_0 = arith.constant 0 : i32
    %c0_i32_1 = arith.constant 0 : i32
    return %c0_i32, %c0_i32_0 : i32, i32
  }
}

</mosaic_0001>

<bundles_post_ra>
// kernel: language_encoder_forward.1
= control target key start
LH: loop header
LB: loop body
LE: loop exit
PB: predicated region body
PF: predicated region fallthrough
CT: control target
= control target key end

     0   :  { %s2412_s0 = inlined_call_operand.vmem [shape: f32[16,32], index: 0, kind: input, shape index: {}]   ;;  %s2413_s1 = inlined_call_operand.vmem [shape: f32[16,16], index: 1, kind: input, shape index: {}]   ;;  %s2414_s2 = inlined_call_operand.vmem [shape: f32[1,32], index: 2, kind: input, shape index: {}]   ;;  %s2415_s3 = inlined_call_operand.vmem [shape: f32[1,32], index: 3, kind: input, shape index: {}]   ;;  %s2416_s4 = inlined_call_operand.vmem [shape: f32[2,32,96], index: 4, kind: input, shape index: {}]   ;;  %s2417_s5 = inlined_call_operand.vmem [shape: f32[2,1,96], index: 5, kind: input, shape index: {}]   ;;  %s2418_s6 = inlined_call_operand.vmem [shape: f32[2,32,32], index: 6, kind: input, shape index: {}]   ;;  %s2419_s7 = inlined_call_operand.vmem [shape: f32[2,1,32], index: 7, kind: input, shape index: {}]   ;;  %s2420_s8 = inlined_call_operand.vmem [shape: f32[2,1,32], index: 8, kind: input, shape index: {}]   ;;  %s2421_s9 = inlined_call_operand.vmem [shape: f32[2,1,32], index: 9, kind: input, shape index: {}]   ;;  %s2422_s10 = inlined_call_operand.vmem [shape: f32[2,32,64], index: 10, kind: input, shape index: {}]   ;;  %s2423_s11 = inlined_call_operand.vmem [shape: f32[2,1,64], index: 11, kind: input, shape index: {}]   ;;  %s2424_s12 = inlined_call_operand.vmem [shape: f32[2,64,32], index: 12, kind: input, shape index: {}]   ;;  %s2425_s13 = inlined_call_operand.vmem [shape: f32[2,1,32], index: 13, kind: input, shape index: {}]   ;;  %s2426_s14 = inlined_call_operand.vmem [shape: f32[2,1,32], index: 14, kind: input, shape index: {}]   ;;  %s2427_s15 = inlined_call_operand.vmem [shape: f32[2,1,32], index: 15, kind: input, shape index: {}]   ;;  %s2428_s16 = inlined_call_operand.vmem [shape: f32[32,32], index: 16, kind: input, shape index: {}]   ;;  %s2429_s17 = inlined_call_operand.vmem [shape: f32[1,32], index: 17, kind: input, shape index: {}]   ;;  %s2430_s18 = inlined_call_operand.hbm [shape: f32[2,32], index: 18, kind: output, shape index: {}]  }
   0x1   :  { %2436 = sst [smem:[#allocation8_spill]] %s2412_s0 }
   0x2   :  { %2437 = sst [smem:[#allocation9_spill]] %s2413_s1 }
   0x3   :  { %2438 = sst [smem:[#allocation10_spill]] %s2414_s2 }
   0x4   :  { %2439 = sst [smem:[#allocation11_spill]] %s2416_s4 }
   0x5   :  { %2440 = sst [smem:[#allocation12_spill]] %s2418_s6 }
   0x6   :  { %2441 = sst [smem:[#allocation13_spill]] %s2428_s16 }
   0x7   :  { %2442 = sst [smem:[#allocation14_spill]] %s2429_s17 }
   0x8   :  { %2443 = sst [smem:[#allocation15_spill]] %s2430_s18 }
   0x9   :  { %23 = vsyncpa [#allocation4], 0  ;;  %s2076_s27 = smov 0  }
   0xa LB: > { %2444 = sst [smem:[#allocation6_spill]] %s1972_s27  ;;  %s2082_s28 = sadd.s32 4294967295, %s1972_s27   ;;  %s1972_s27 = sphi %s2076_s27, %s29_s27  }
   0xb   : > { %p1765_p0 = scmp.ge.s32.totalorder %s1972_s27, 1  ;;  %p602_p1 = scmp.lt.s32.totalorder %s1972_s27, 3 }
   0xd   : > { %p603_p2 = pnand %p1765_p0, %p602_p1 }
   0xf   : > { %606 = sbr.rel (%p603_p2) target bundleno = 2448 (0x990), region = 92 }
  0x14   : > { %p690_p3 = scmp.lt.s32.totalorder %s2082_s28, 1  ;;  %s2445_s4 = sld [smem:[#allocation11_spill]] }
  0x15   : > { %s2446_s6 = sld [smem:[#allocation12_spill]]  ;;  %p1774_p4 = scmp.ne.s32.totalorder %s2082_s28, 0 }
  0x16   : > { %s2088_s29 = scalar_select %p690_p3, %s2082_s28, 1 }
  0x17   : > { %s2448_s25 = sld [smem:[#allocation8_spill]] (!%p1774_p4) }
  0x18   : > { %s1814_s30 = sshll.u32 %s2088_s29, 5  ;;  %s727_s0 = scalar_lea.vmem %s2425_s13, %s2088_s29 }
  0x19   : > { %s730_s20 = scalar_lea.vmem %s2426_s14, %s2088_s29  ;;  %s733_s16 = scalar_lea.vmem %s2427_s15, %s2088_s29 }
  0x1a   : > { %s2098_s22 = scalar_lea.vmem %s2445_s4, %s1814_s30  ;;  %s2120_s4 = scalar_lea.vmem %s2422_s10, %s1814_s30 }
  0x1b   : > { %s2103_s24 = scalar_lea.vmem %s2446_s6, %s1814_s30  ;;  %s719_s6 = scalar_lea.vmem %s2423_s11, %s2088_s29 }
  0x1c   : > { %2447 = sst [smem:[#allocation7_spill]] %s2103_s24  ;;  %s1817_s24 = sshll.u32 %s2088_s29, 6 }
  0x1d   : > { %s2130_s27 = scalar_lea.vmem %s2424_s12, %s1817_s24  ;;  %737 = sbr.rel (%p1774_p4) target bundleno = 312 (0x138), region = 96 }
  0x1e   : > { %s2449_s18 = sld [smem:[#allocation10_spill]] (!%p1774_p4) }
  0x22   : > { %v738_v0 = vld [vmem:[%s2448_s25] sm:$0xff]  ;;  %vm742_vm0 = vcmask 261120   ;;  %v739_v2 = vld [vmem:[%s2448_s25 + $0x8] sm:$0xff]  ;;  %v1974_v4 = vmov 32.0  }
  0x23   : > { %v743_v1 = vsel %vm742_vm0, %v738_v0, 0.0  ;;  %v746_v3 = vsel %vm742_vm0, %v739_v2, 0.0  ;;  %1841 = vrcp.f32 %v1974_v4  ;;  %v1840_v38 = vld [vmem:[%s2415_s3] ss:$0 sm:$0xff] }
  0x24   : > { %744 = vadd.xlane.f32.xlu0 %v743_v1  ;;  %v1839_v35 = vld [vmem:[%s2449_s18] ss:$0 sm:$0xff] }
  0x29   : > { %v1842_v5 = vpop.eup %1841 }
  0x2a   : > { %v750_v6 = vmul.f32 32.0, %v1842_v5  ;;  %vm754_vm1 = vweird.f32 %v1842_v5 }
  0x2c   : > { %747 = vadd.xlane.f32.xlu0 %v746_v3  ;;  %v751_v7 = vsub.f32 1.0, %v750_v6 }
  0x2e   : > { %v752_v8 = vmul.f32 %v1842_v5, %v751_v7 }
  0x30   : > { %v753_v9 = vadd.f32 %v1842_v5, %v752_v8 }
  0x32   : > { %v755_v10 = vsel %vm754_vm1, %v1842_v5, %v753_v9 }
  0x97   : > { %v745_v11 = vpop.xlane.xlu0 %744 }
  0x98   : > { %v756_v12 = vmul.f32 %v755_v10, %v745_v11 }
  0x9a   : > { %v758_v13 = vsub.f32 %v738_v0, %v756_v12 }
  0x9c   : > { %v760_v14 = vmul.f32 %v758_v13, %v758_v13 }
  0x9e   : > { %v762_v15 = vsel %vm742_vm0, %v760_v14, 0.0 }
  0x9f   : > { %763 = vadd.xlane.f32.xlu1 %v762_v15  ;;  %v748_v16 = vpop.xlane.xlu0 %747 }
  0xa0   : > { %v757_v17 = vmul.f32 %v755_v10, %v748_v16 }
  0xa2   : > { %v759_v18 = vsub.f32 %v739_v2, %v757_v17 }
  0xa4   : > { %v761_v19 = vmul.f32 %v759_v18, %v759_v18 }
  0xa6   : > { %v765_v20 = vsel %vm742_vm0, %v761_v19, 0.0 }
  0xa7   : > { %766 = vadd.xlane.f32.xlu1 %v765_v20 }
 0x112   : > { %v764_v21 = vpop.xlane.xlu1 %763 }
 0x113   : > { %v768_v22 = vmul.f32 %v764_v21, %v755_v10 }
 0x115   : > { %v770_v23 = vadd.f32 1e-12, %v768_v22 }
 0x117   : > { %1843 = vrsqrt.f32 %v770_v23  ;;  %vm778_vm3 = vweird.f32 %v770_v23 }
 0x11a   : > { %v767_v24 = vpop.xlane.xlu1 %766 }
 0x11b   : > { %v769_v25 = vmul.f32 %v767_v24, %v755_v10 }
 0x11d   : > { %v1844_v26 = vpop.eup %1843  ;;  %v771_v27 = vadd.f32 1e-12, %v769_v25 }
 0x11e   : > { %v773_v28 = vmul.f32 %v1844_v26, %v770_v23  ;;  %vm779_vm2 = vweird.f32 %v1844_v26 }
 0x11f   : > { %1845 = vrsqrt.f32 %v771_v27  ;;  %vm780_vm4 = vmor %vm778_vm3, %vm779_vm2  ;;  %vm788_vm6 = vweird.f32 %v771_v27 }
 0x120   : > { %v774_v29 = vmul.f32 %v1844_v26, %v773_v28 }
 0x122   : > { %v775_v30 = vmul.f32 0.5, %v774_v29 }
 0x124   : > { %v776_v31 = vsub.f32 1.5, %v775_v30 }
 0x125   : > { %v1846_v32 = vpop.eup %1845 }
 0x126   : > { %v777_v33 = vmul.f32 %v1844_v26, %v776_v31  ;;  %v783_v34 = vmul.f32 %v1846_v32, %v771_v27  ;;  %vm789_vm5 = vweird.f32 %v1846_v32 }
 0x127   : > { %vm790_vm7 = vmor %vm788_vm6, %vm789_vm5 }
 0x128   : > { %v781_v36 = vsel %vm780_vm4, %v1844_v26, %v777_v33  ;;  %v784_v37 = vmul.f32 %v1846_v32, %v783_v34 }
 0x129   : > { %v792_v39 = vmul.f32 %v781_v36, %v758_v13 }
 0x12a   : > { %v785_v40 = vmul.f32 0.5, %v784_v37 }
 0x12b   : > { %v797_v41 = vmul.f32 %v1839_v35, %v792_v39 }
 0x12c   : > { %v786_v42 = vsub.f32 1.5, %v785_v40 }
 0x12d   : > { %v802_v43 = vadd.f32 %v1840_v38, %v797_v41 }
 0x12e   : > { %v787_v44 = vmul.f32 %v1846_v32, %v786_v42 }
 0x12f   : > { %804 = vst.msk [vmem:[#allocation2] sm:$0xff] %vm742_vm0, %v802_v43 }
 0x130   : > { %v791_v45 = vsel %vm790_vm7, %v1846_v32, %v787_v44 }
 0x131   : > { %v793_v46 = vmul.f32 %v791_v45, %v759_v18 }
 0x133   : > { %v798_v47 = vmul.f32 %v1839_v35, %v793_v46 }
 0x135   : > { %v803_v48 = vadd.f32 %v1840_v38, %v798_v47 }
 0x137   : > { %805 = vst.msk [vmem:[#allocation2 + $0x8] sm:$0xff] %vm742_vm0, %v803_v48 }
 0x138 PF: > { %v811_v49 = vld [vmem:[%s2098_s22 + $0x18] sm:$0xff]  ;;  %v810_v50 = vld [vmem:[%s2098_s22 + $0x10] sm:$0xff]  ;;  %v809_v51 = vld [vmem:[%s2098_s22 + $0x8] sm:$0xff]  ;;  %vm816_vm8 = vcmask 261120   ;;  %s2450_s23 = scalar_lea.vmem %s2417_s5, %s2088_s29  ;;  %v848_v60 = vlaneseq  ;;  %v1976_v63 = vmov 0.0   ;;  %s2451_s1 = sld [smem:[#allocation9_spill]] }
 0x139   : > { %835 = vmatpush.msra.mxu0 %v811_v49  ;;  %v808_v52 = vld [vmem:[%s2098_s22] sm:$0xff]  ;;  %s1975_s22 = smov 96   ;;  %vm899_vm3 = vcmask 130048   ;;  %s1977_s19 = smov 64  }
 0x13a   : > { %v2167_v53 = vld [vmem:[#allocation2] sm:$0xff]  ;;  %v2187_v61 = vand.u32 127, %v848_v60  ;;  %s2452_s30 = sld [smem:[#allocation7_spill]]  ;;  %s2454_s24 = scalar_lea.vmem %s2420_s8, %s2088_s29 }
 0x13b   : > { %836 = vmatpush.msra.mxu0 %v810_v50  ;;  %v1877_v56 = vld [vmem:[%s2450_s23] ss:$0 sm:$0xff]  ;;  %s2453_s23 = scalar_lea.vmem %s2419_s7, %s2088_s29  ;;  %s2455_s18 = scalar_lea.vmem %s2421_s9, %s2088_s29 }
 0x13c   : > { %vm928_vm9 = vcmp.ge.s32.totalorder %v2187_v61, 8  ;;  %vm929_vm10 = vcmp.lt.s32.totalorder %v2187_v61, 16  ;;  %vm1069_vm11 = vcmp.ge.s32.totalorder %v2187_v61, 16  ;;  %vm1070_vm12 = vcmp.lt.s32.totalorder %v2187_v61, 24  ;;  %p1807_p5 = scmp.ne.s32.totalorder %s2082_s28, 1 }
 0x13d   : > { %837 = vmatpush.msra.mxu0 %v809_v51  ;;  %vm851_vm13 = vcmp.lt.s32.totalorder %v2187_v61, 8  ;;  %vm930_vm14 = vmand %vm928_vm9, %vm929_vm10  ;;  %vm1175_vm0 = vcmp.ge.s32.totalorder %v2187_v61, 24  ;;  %vm1176_vm1 = vcmp.lt.s32.totalorder %v2187_v61, 32 }
 0x13e   : > { %v2171_v54 = vld [vmem:[#allocation2 + $0x8] sm:$0xff]  ;;  %vm1071_vm15 = vmand %vm1069_vm11, %vm1070_vm12  ;;  %v853_v0 = vsel %vm851_vm13, 1.0, %v1976_v63  ;;  %v931_v1 = vsel %vm930_vm14, 1.0, %v1976_v63  ;;  %v846_v14 = vld [vmem:[%s2451_s1] sm:$0xff]  ;;  %vm1450_vm12 = vcmask 523264  }
 0x13f   : > { %838 = vmatpush.msra.mxu0 %v808_v52  ;;  %v1072_v3 = vsel %vm1071_vm15, 1.0, %v1976_v63  ;;  %vm1177_vm2 = vmand %vm1175_vm0, %vm1176_vm1  ;;  %v847_v22 = vld [vmem:[%s2451_s1 + $0x8] sm:$0xff]  ;;  %v1847_v31 = vpack.i.bf16 %v853_v0, %v931_v1 }
 0x140   : > { %1775 = vmatmul.msk.f32.vlgmr.msra.gmra.mxu0 %vm816_vm8, %v2167_v53  ;;  %v1178_v10 = vsel %vm1177_vm2, 1.0, %v1976_v63 }
 0x141   : > { %v1852_v32 = vpack.i.bf16 %v1072_v3, %v1178_v10 }
 0x148   : > { %1776 = vmatmul.msk.f32.gmra.mxu0 %vm816_vm8, %v2171_v54 }
 0x1bd   : > { %v840_v55 = vpop.f32.mrf.mxu0 }
 0x1be   : > { %v2183_v59 = vadd.f32 %v1877_v56, %v840_v55 }
 0x1c0   : > { %v854_v4 = vmul.f32 %v853_v0, %v2183_v59  ;;  %v932_v5 = vmul.f32 %v931_v1, %v2183_v59  ;;  %v1073_v6 = vmul.f32 %v1072_v3, %v2183_v59  ;;  %v1179_v11 = vmul.f32 %v1178_v10, %v2183_v59 }
 0x1c5   : > { %v843_v57 = vpop.f32.mrf.mxu0 }
 0x1c6   : > { %v2180_v58 = vadd.f32 %v1877_v56, %v843_v57 }
 0x1c8   : > { %860 = vrot.lane.b32.xlu0 %v2180_v58, %s1975_s22  ;;  %v855_v7 = vmul.f32 %v853_v0, %v2180_v58  ;;  %v933_v8 = vmul.f32 %v931_v1, %v2180_v58  ;;  %v1074_v9 = vmul.f32 %v1072_v3, %v2180_v58  ;;  %v1180_v12 = vmul.f32 %v1178_v10, %v2180_v58 }
 0x1d0   : > { %858 = vrot.lane.b32.xlu0 %v2183_v59, %s1975_s22 }
 0x23a   : > { %v861_v62 = vpop.permute.xlu0 %860 }
 0x23b   : > { %1777 = vmatpush.xpose.msk.msra.mxu1 %vm816_vm8, %v861_v62  ;;  %1781 = vmatpush.xpose.msk.msra.mxu2 %vm816_vm8, %v861_v62 }
 0x23c   : > { %1789 = vmatpush.xpose.msk.msrb.mxu0 %vm816_vm8, %v861_v62 }
 0x242   : > { %v859_v2 = vpop.permute.xlu0 %858 }
 0x243   : > { %1778 = vmatpush.xpose.msk.msra.mxu1 %vm816_vm8, %v859_v2  ;;  %1782 = vmatpush.xpose.msk.msra.mxu2 %vm816_vm8, %v859_v2 }
 0x244   : > { %1790 = vmatpush.xpose.msk.msrb.mxu0 %vm816_vm8, %v859_v2 }
 0x246   : > { %1779 = vmatmul.msk.f32.vlgmr.msra.gmra.mxu1 %vm816_vm8, %v854_v4  ;;  %1783 = vmatmul.msk.f32.vlgmr.msra.gmra.mxu2 %vm816_vm8, %v932_v5 }
 0x247   : > { %1795 = vmatpush.xpose.msk.msrb.mxu2 %vm816_vm8, %v861_v62  ;;  %1791 = vmatmul.msk.f32.vlgmr.msrb.gmra.mxu0 %vm816_vm8, %v1073_v6 }
 0x24b   : > { %1796 = vmatpush.xpose.msk.msrb.mxu2 %vm816_vm8, %v859_v2 }
 0x24e   : > { %1780 = vmatmul.msk.f32.gmra.mxu1 %vm816_vm8, %v855_v7  ;;  %1784 = vmatmul.msk.f32.gmra.mxu2 %vm816_vm8, %v933_v8 }
 0x24f   : > { %1792 = vmatmul.msk.f32.gmra.mxu0 %vm816_vm8, %v1074_v9 }
 0x256   : > { %1797 = vmatmul.msk.f32.vlgmr.msrb.gmra.mxu2 %vm816_vm8, %v1179_v11 }
 0x25e   : > { %1798 = vmatmul.msk.f32.gmra.mxu2 %vm816_vm8, %v1180_v12 }
 0x2c3   : > { %v889_v13 = vpop.f32.mrf.mxu1 }
 0x2c4   : > { %v895_v15 = vmul.f32 0.35355338, %v889_v13  ;;  %v1098_v20 = vpop.f32.mrf.mxu0 }
 0x2c5   : > { %v1104_v25 = vmul.f32 0.35355338, %v1098_v20 }
 0x2c6   : > { %v2223_v16 = vadd.f32 %v895_v15, %v846_v14 }
 0x2c7   : > { %v2235_v29 = vadd.f32 %v1104_v25, %v846_v14 }
 0x2c8   : > { %v900_v17 = vsel %vm899_vm3, %v2223_v16, -inf }
 0x2c9   : > { %v957_v18 = vpop.f32.mrf.mxu2  ;;  %901 = vmax.xlane.f32.xlu2 %v900_v17  ;;  %v1108_v30 = vsel %vm899_vm3, %v2235_v29, -inf }
 0x2ca   : > { %v963_v19 = vmul.f32 0.35355338, %v957_v18 }
 0x2cb   : > { %v892_v21 = vpop.f32.mrf.mxu1 }
 0x2cc   : > { %v896_v23 = vmul.f32 0.35355338, %v892_v21  ;;  %v965_v24 = vadd.f32 %v963_v19, %v846_v14  ;;  %v1101_v33 = vpop.f32.mrf.mxu0 }
 0x2cd   : > { %v1105_v34 = vmul.f32 0.35355338, %v1101_v33 }
 0x2ce   : > { %v967_v26 = vsel %vm899_vm3, %v965_v24, -inf  ;;  %v2231_v27 = vadd.f32 %v896_v23, %v847_v22 }
 0x2cf   : > { %968 = vmax.xlane.f32.xlu1 %v967_v26  ;;  %v2241_v35 = vadd.f32 %v1105_v34, %v847_v22 }
 0x2d0   : > { %v903_v28 = vsel %vm899_vm3, %v2231_v27, -inf }
 0x2d1   : > { %904 = vmax.xlane.f32.xlu0 %v903_v28  ;;  %v1111_v36 = vsel %vm899_vm3, %v2241_v35, -inf  ;;  %v960_v37 = vpop.f32.mrf.mxu2 }
 0x2d2   : > { %v964_v38 = vmul.f32 0.35355338, %v960_v37 }
 0x2d4   : > { %v966_v40 = vadd.f32 %v964_v38, %v847_v22 }
 0x2d6   : > { %v970_v42 = vsel %vm899_vm3, %v966_v40, -inf }
 0x2d7   : > { %1109 = vmax.xlane.f32.xlu1 %v1108_v30 }
 0x2d9   : > { %v1204_v39 = vpop.f32.mrf.mxu2 }
 0x2da   : > { %v1210_v41 = vmul.f32 0.35355338, %v1204_v39 }
 0x2dc   : > { %v2246_v43 = vadd.f32 %v1210_v41, %v846_v14 }
 0x2de   : > { %v1214_v46 = vsel %vm899_vm3, %v2246_v43, -inf }
 0x2e1   : > { %1848 = vrot.lane.b32.xlu2 %v1847_v31, %s1977_s19  ;;  %v1207_v44 = vpop.f32.mrf.mxu2 }
 0x2e2   : > { %v1211_v45 = vmul.f32 0.35355338, %v1207_v44 }
 0x2e4   : > { %v2250_v47 = vadd.f32 %v1211_v45, %v847_v22 }
 0x2e6   : > { %v1217_v48 = vsel %vm899_vm3, %v2250_v47, -inf }
 0x2f0   : > { %1853 = vrot.lane.b32.xlu1 %v1852_v32, %s1977_s19 }
 0x30a   : > { %1112 = vmax.xlane.f32.xlu2 %v1111_v36 }
 0x31a   : > { %971 = vmax.xlane.f32.xlu1 %v970_v42 }
 0x322   : > { %1215 = vmax.xlane.f32.xlu1 %v1214_v46 }
 0x32a   : > { %1218 = vmax.xlane.f32.xlu1 %v1217_v48 }
 0x33c   : > { %v902_v49 = vpop.xlane.xlu2 %901 }
 0x33d   : > { %v906_v9 = vsub.f32 %v2223_v16, %v902_v49 }
 0x33f   : > { %v908_v14 = vmul.f32 1.442695, %v906_v9 }
 0x342   : > { %v969_v50 = vpop.xlane.xlu1 %968 }
 0x343   : > { %v973_v51 = vsub.f32 %v965_v24, %v969_v50 }
 0x344   : > { %v1849_v52 = vpop.permute.xlu2 %1848  ;;  %v905_v20 = vpop.xlane.xlu0 %904 }
 0x345   : > { %v975_v55 = vmul.f32 1.442695, %v973_v51  ;;  %v1851_v56 = vunpack.i.h.bf16 %v1849_v52  ;;  %v1850_v57 = vunpack.i.l.bf16 %v1849_v52  ;;  %v907_v23 = vsub.f32 %v2231_v27, %v905_v20 }
 0x347   : > { %1885 = vpow2.f32 %v975_v55  ;;  %v926_v62 = vmul.f32 %v1851_v56, %v2183_v59  ;;  %v927_v63 = vmul.f32 %v1851_v56, %v2180_v58  ;;  %v993_v0 = vmul.f32 %v1850_v57, %v2183_v59 }
 0x348   : > { %v994_v1 = vmul.f32 %v1850_v57, %v2180_v58  ;;  %1887 = vpow2.f32 %v908_v14 }
 0x349   : > { %v1862_v2 = vpack.i.bf16 %v926_v62, %v927_v63 }
 0x34a   : > { %v1857_v3 = vpack.i.bf16 %v993_v0, %v994_v1  ;;  %v1110_v6 = vpop.xlane.xlu1 %1109 }
 0x34b   : > { %1863 = vrot.lane.b32.xlu2 %v1862_v2, %s1977_s19 }
 0x34c   : > { %1858 = vrot.lane.b32.xlu1 %v1857_v3, %s1977_s19 }
 0x34d   : > { %v2260_v4 = vpop.eup %1885 }
 0x34e   : > { %v979_v5 = vsel %vm899_vm3, %v2260_v4, 0.0  ;;  %v2271_v19 = vpop.eup %1887 }
 0x34f   : > { %980 = vadd.xlane.f32.xlu0 %v979_v5  ;;  %v912_v16 = vsel %vm899_vm3, %v2271_v19, 0.0 }
 0x362   : > { %v1854_v7 = vpop.permute.xlu1 %1853 }
 0x363   : > { %v1855_v8 = vunpack.i.l.bf16 %v1854_v7  ;;  %v1856_v12 = vunpack.i.h.bf16 %v1854_v7 }
 0x365   : > { %v1240_v10 = vmul.f32 %v1855_v8, %v2183_v59  ;;  %v1241_v11 = vmul.f32 %v1855_v8, %v2180_v58  ;;  %v1134_v15 = vmul.f32 %v1856_v12, %v2183_v59  ;;  %v1135_v17 = vmul.f32 %v1856_v12, %v2180_v58 }
 0x366   : > { %v910_v59 = vmul.f32 1.442695, %v907_v23  ;;  %v1114_v58 = vsub.f32 %v2235_v29, %v1110_v6 }
 0x367   : > { %v1867_v13 = vpack.i.bf16 %v1240_v10, %v1241_v11  ;;  %v1872_v18 = vpack.i.bf16 %v1134_v15, %v1135_v17 }
 0x368   : > { %v1116_v30 = vmul.f32 1.442695, %v1114_v58  ;;  %v1282_v58 = vld [vmem:[%s2452_s30 + $0x8] sm:$0xff] }
 0x369   : > { %1868 = vrot.lane.b32.xlu2 %v1867_v13, %s1977_s19 }
 0x371   : > { %1873 = vrot.lane.b32.xlu2 %v1872_v18, %s1977_s19 }
 0x376   : > { %913 = vadd.xlane.f32.xlu1 %v912_v16 }
 0x37d   : > { %v1113_v39 = vpop.xlane.xlu2 %1112 }
 0x37e   : > { %v1115_v41 = vsub.f32 %v2241_v35, %v1113_v39 }
 0x38d   : > { %v972_v21 = vpop.xlane.xlu1 %971 }
 0x38e   : > { %v974_v22 = vsub.f32 %v966_v40, %v972_v21 }
 0x390   : > { %v977_v24 = vmul.f32 1.442695, %v974_v22 }
 0x392   : > { %1889 = vpow2.f32 %v977_v24 }
 0x393   : > { %1891 = vpow2.f32 %v910_v59  ;;  %v1284_v59 = vld [vmem:[%s2452_s30 + $0x18] sm:$0xff] }
 0x394   : > { %1893 = vpow2.f32 %v1116_v30  ;;  %1307 = vmatpush.msra.mxu0 %v1284_v59 }
 0x395   : > { %v1216_v28 = vpop.xlane.xlu1 %1215 }
 0x396   : > { %v1220_v32 = vsub.f32 %v2246_v43, %v1216_v28  ;;  %v1118_v43 = vmul.f32 1.442695, %v1115_v41  ;;  %v1281_v28 = vld [vmem:[%s2452_s30] sm:$0xff] }
 0x398   : > { %v2276_v25 = vpop.eup %1889  ;;  %v1222_v33 = vmul.f32 1.442695, %v1220_v32 }
 0x399   : > { %v982_v26 = vsel %vm899_vm3, %v2276_v25, 0.0  ;;  %v2281_v31 = vpop.eup %1891 }
 0x39a   : > { %983 = vadd.xlane.f32.xlu0 %v982_v26  ;;  %v915_v27 = vsel %vm899_vm3, %v2281_v31, 0.0  ;;  %v2286_v36 = vpop.eup %1893  ;;  %1895 = vpow2.f32 %v1222_v33 }
 0x39b   : > { %v1120_v37 = vsel %vm899_vm3, %v2286_v36, 0.0 }
 0x39d   : > { %v1219_v34 = vpop.xlane.xlu1 %1218 }
 0x39e   : > { %v1221_v29 = vsub.f32 %v2250_v47, %v1219_v34 }
 0x3a0   : > { %v1224_v38 = vmul.f32 1.442695, %v1221_v29  ;;  %v1896_v40 = vpop.eup %1895 }
 0x3a1   : > { %v1226_v42 = vsel %vm899_vm3, %v1896_v40, 0.0 }
 0x3a2   : > { %916 = vadd.xlane.f32.xlu0 %v915_v27  ;;  %1897 = vpow2.f32 %v1224_v38 }
 0x3a3   : > { %1899 = vpow2.f32 %v1118_v43 }
 0x3a5   : > { %v1864_v46 = vpop.permute.xlu2 %1863 }
 0x3a6   : > { %v1865_v52 = vunpack.i.l.bf16 %v1864_v46  ;;  %v1866_v56 = vunpack.i.h.bf16 %v1864_v46 }
 0x3a8   : > { %v1898_v44 = vpop.eup %1897 }
 0x3a9   : > { %v1229_v45 = vsel %vm899_vm3, %v1898_v44, 0.0  ;;  %v1900_v47 = vpop.eup %1899 }
 0x3aa   : > { %1121 = vadd.xlane.f32.xlu0 %v1120_v37  ;;  %v1123_v51 = vsel %vm899_vm3, %v1900_v47, 0.0 }
 0x3b2   : > { %1227 = vadd.xlane.f32.xlu0 %v1226_v42  ;;  %v1878_v42 = vld [vmem:[%s2453_s23] ss:$0 sm:$0xff] }
 0x3ba   : > { %1230 = vadd.xlane.f32.xlu0 %v1229_v45 }
 0x3be   : > { %v1859_v48 = vpop.permute.xlu1 %1858 }
 0x3bf   : > { %v1860_v49 = vunpack.i.l.bf16 %v1859_v48  ;;  %v1861_v50 = vunpack.i.h.bf16 %v1859_v48 }
 0x3c1   : > { %1023 = vmatpush.msra.mxu3 %v1860_v49 }
 0x3c2   : > { %1124 = vadd.xlane.f32.xlu0 %v1123_v51  ;;  %v981_v35 = vpop.xlane.xlu0 %980  ;;  %v1978_v51 = vmov 32.0  }
 0x3c3   : > { %1024 = vmatpush.msra.mxu3 %v1861_v50  ;;  %1901 = vrcp.f32 %v981_v35  ;;  %v1869_v55 = vpop.permute.xlu2 %1868 }
 0x3c4   : > { %v1870_v63 = vunpack.i.l.bf16 %v1869_v55  ;;  %v1871_v2 = vunpack.i.h.bf16 %v1869_v55 }
 0x3c5   : > { %1060 = vmatpush.msrb.mxu3 %v1865_v52 }
 0x3c7   : > { %1061 = vmatpush.msrb.mxu3 %v1866_v56 }
 0x3c9   : > { %v1902_v57 = vpop.eup %1901 }
 0x3ca   : > { %v987_v62 = vmul.f32 %v1902_v57, %v2260_v4 }
 0x3cb   : > { %v1874_v0 = vpop.permute.xlu2 %1873 }
 0x3cc   : > { %1785 = vmatmul.msk.f32.vlgmr.msra.gmra.mxu3 %vm899_vm3, %v987_v62  ;;  %v1875_v1 = vunpack.i.l.bf16 %v1874_v0  ;;  %v1876_v3 = vunpack.i.h.bf16 %v1874_v0 }
 0x3cd   : > { %1270 = vmatpush.msra.mxu3 %v1870_v63 }
 0x3ce   : > { %1164 = vmatpush.msrb.mxu1 %v1875_v1 }
 0x3cf   : > { %1271 = vmatpush.msra.mxu3 %v1871_v2 }
 0x3d0   : > { %1165 = vmatpush.msrb.mxu1 %v1876_v3 }
 0x3e9   : > { %v914_v6 = vpop.xlane.xlu1 %913 }
 0x40d   : > { %v984_v5 = vpop.xlane.xlu0 %983 }
 0x40e   : > { %1903 = vrcp.f32 %v984_v5 }
 0x40f   : > { %1905 = vrcp.f32 %v914_v6 }
 0x414   : > { %v1904_v7 = vpop.eup %1903 }
 0x415   : > { %v917_v8 = vpop.xlane.xlu0 %916  ;;  %v988_v9 = vmul.f32 %v1904_v7, %v2276_v25  ;;  %v1906_v4 = vpop.eup %1905  ;;  %v1283_v25 = vld [vmem:[%s2452_s30 + $0x10] sm:$0xff] }
 0x416   : > { %1907 = vrcp.f32 %v917_v8  ;;  %v920_v11 = vmul.f32 %v1906_v4, %v2271_v19  ;;  %1308 = vmatpush.msra.mxu0 %v1283_v25  ;;  %v1386_v8 = vld [vmem:[%s2120_s4 + $0x18] sm:$0xff]  ;;  %v1384_v4 = vld [vmem:[%s2120_s4 + $0x8] sm:$0xff] }
 0x417   : > { %1786 = vmatmul.msk.f32.gmra.mxu3 %vm899_vm3, %v988_v9  ;;  %1409 = vmatpush.msra.mxu1 %v1386_v8  ;;  %v1385_v9 = vld [vmem:[%s2120_s4 + $0x10] sm:$0xff] }
 0x418   : > { %1309 = vmatpush.msra.mxu0 %v1282_v58  ;;  %v1880_v58 = vld [vmem:[%s2455_s18] ss:$0 sm:$0xff] }
 0x419   : > { %1410 = vmatpush.msra.mxu1 %v1385_v9 }
 0x41a   : > { %1310 = vmatpush.msra.mxu0 %v1281_v28 }
 0x41b   : > { %1411 = vmatpush.msra.mxu1 %v1384_v4  ;;  %v1882_v4 = vld [vmem:[%s727_s0] ss:$0 sm:$0xff] }
 0x41c   : > { %v1908_v12 = vpop.eup %1907 }
 0x41d   : > { %v1122_v10 = vpop.xlane.xlu0 %1121  ;;  %v921_v15 = vmul.f32 %v1908_v12, %v2281_v31 }
 0x41e   : > { %1909 = vrcp.f32 %v1122_v10  ;;  %v1383_v10 = vld [vmem:[%s2120_s4] sm:$0xff] }
 0x41f   : > { %1787 = vmatmul.msk.f32.vlgmr.msrb.gmra.mxu3 %vm899_vm3, %v920_v11  ;;  %1412 = vmatpush.msra.mxu1 %v1383_v10 }
 0x424   : > { %v1910_v13 = vpop.eup %1909 }
 0x425   : > { %v1228_v14 = vpop.xlane.xlu0 %1227  ;;  %v1128_v17 = vmul.f32 %v1910_v13, %v2286_v36 }
 0x426   : > { %1911 = vrcp.f32 %v1228_v14 }
 0x427   : > { %1788 = vmatmul.msk.f32.gmra.mxu3 %vm899_vm3, %v921_v15  ;;  %1793 = vmatmul.msk.f32.vlgmr.msrb.gmra.mxu1 %vm899_vm3, %v1128_v17 }
 0x42c   : > { %v1912_v18 = vpop.eup %1911 }
 0x42d   : > { %v1234_v19 = vmul.f32 %v1912_v18, %v1896_v40  ;;  %v1231_v16 = vpop.xlane.xlu0 %1230 }
 0x42e   : > { %1913 = vrcp.f32 %v1231_v16 }
 0x42f   : > { %1799 = vmatmul.msk.f32.vlgmr.msra.gmra.mxu3 %vm899_vm3, %v1234_v19 }
 0x434   : > { %v1914_v20 = vpop.eup %1913 }
 0x435   : > { %v1125_v21 = vpop.xlane.xlu0 %1124  ;;  %v1235_v22 = vmul.f32 %v1914_v20, %v1898_v44 }
 0x436   : > { %1915 = vrcp.f32 %v1125_v21 }
 0x437   : > { %1800 = vmatmul.msk.f32.gmra.mxu3 %vm899_vm3, %v1235_v22  ;;  %1917 = vrcp.f32 %v1978_v51 }
 0x43c   : > { %v1916_v23 = vpop.eup %1915 }
 0x43d   : > { %v1129_v24 = vmul.f32 %v1916_v23, %v1900_v47  ;;  %v1918_v35 = vpop.eup %1917  ;;  %v1879_v23 = vld [vmem:[%s2454_s24] ss:$0 sm:$0xff] }
 0x43e   : > { %v1329_v52 = vmul.f32 32.0, %v1918_v35  ;;  %vm1333_vm4 = vweird.f32 %v1918_v35 }
 0x43f   : > { %1794 = vmatmul.msk.f32.gmra.mxu1 %vm899_vm3, %v1129_v24 }
 0x440   : > { %v1330_v55 = vsub.f32 1.0, %v1329_v52 }
 0x442   : > { %v1331_v56 = vmul.f32 %v1918_v35, %v1330_v55 }
 0x444   : > { %v1332_v57 = vadd.f32 %v1918_v35, %v1331_v56 }
 0x44f   : > { %v1026_v26 = vpop.f32.mrf.mxu3 }
 0x49a   : > { %v1029_v30 = vpop.f32.mrf.mxu3 }
 0x4a2   : > { %v1063_v31 = vpop.f32.mrf.mxu3 }
 0x4a3   : > { %v1064_v27 = vadd.f32 %v1063_v31, %v1026_v26 }
 0x4a4   : > { %v1167_v33 = vpop.f32.mrf.mxu1 }
 0x4a5   : > { %v1173_v34 = vadd.f32 %v1167_v33, %v1064_v27 }
 0x4aa   : > { %v1066_v32 = vpop.f32.mrf.mxu3 }
 0x4ab   : > { %v1067_v37 = vadd.f32 %v1066_v32, %v1029_v30 }
 0x4b2   : > { %v1273_v36 = vpop.f32.mrf.mxu3 }
 0x4b3   : > { %v1279_v29 = vadd.f32 %v1273_v36, %v1173_v34 }
 0x4b5   : > { %1801 = vmatmul.msk.f32.vlgmr.msra.gmra.mxu0 %vm816_vm8, %v1279_v29 }
 0x4ba   : > { %v1276_v40 = vpop.f32.mrf.mxu3 }
 0x4bc   : > { %v1170_v38 = vpop.f32.mrf.mxu1 }
 0x4bd   : > { %v1174_v39 = vadd.f32 %v1170_v38, %v1067_v37  ;;  %v1445_v38 = vld [vmem:[%s2130_s27 + $0x38] sm:$0xff] }
 0x4be   : > { %1465 = vmatpush.msra.mxu2 %v1445_v38 }
 0x4bf   : > { %v1280_v41 = vadd.f32 %v1276_v40, %v1174_v39  ;;  %v1444_v39 = vld [vmem:[%s2130_s27 + $0x30] sm:$0xff]  ;;  %v1443_v40 = vld [vmem:[%s2130_s27 + $0x28] sm:$0xff] }
 0x4c0   : > { %1466 = vmatpush.msra.mxu2 %v1444_v39  ;;  %v1883_v39 = vld [vmem:[%s730_s20] ss:$0 sm:$0xff]  ;;  %s2456_s20 = sld [smem:[#allocation13_spill]] (!%p1807_p5) }
 0x4c1   : > { %1802 = vmatmul.msk.f32.gmra.mxu0 %vm816_vm8, %v1280_v41  ;;  %v1442_v41 = vld [vmem:[%s2130_s27 + $0x20] sm:$0xff] }
 0x4c2   : > { %1467 = vmatpush.msra.mxu2 %v1443_v40 }
 0x4c4   : > { %1468 = vmatpush.msra.mxu2 %v1442_v41 }
 0x532   : > { %v1312_v43 = vpop.f32.mrf.mxu0 }
 0x533   : > { %v1313_v44 = vadd.f32 %v1878_v42, %v1312_v43  ;;  %v1440_v43 = vld [vmem:[%s2130_s27 + $0x10] sm:$0xff] }
 0x535   : > { %v1318_v45 = vadd.f32 %v1313_v44, %v2167_v53  ;;  %v2323_v53 = vsel %vm1333_vm4, %v1918_v35, %v1332_v57  ;;  %v1439_v44 = vld [vmem:[%s2130_s27 + $0x8] sm:$0xff] }
 0x537   : > { %v1322_v46 = vsel %vm816_vm8, %v1318_v45, 0.0 }
 0x538   : > { %1323 = vadd.xlane.f32.xlu2 %v1322_v46  ;;  %v1881_v46 = vld [vmem:[%s719_s6] ss:$0 sm:$0xff]  ;;  %s2457_s6 = sld [smem:[#allocation14_spill]] (!%p1807_p5) }
 0x53e   : > { %v1315_v47 = vpop.f32.mrf.mxu0 }
 0x53f   : > { %v1316_v48 = vadd.f32 %v1878_v42, %v1315_v47  ;;  %v1441_v42 = vld [vmem:[%s2130_s27 + $0x18] sm:$0xff] }
 0x540   : > { %1469 = vmatpush.msra.mxu2 %v1441_v42 }
 0x541   : > { %v1319_v49 = vadd.f32 %v1316_v48, %v2171_v54 }
 0x542   : > { %1470 = vmatpush.msra.mxu2 %v1440_v43 }
 0x543   : > { %v1325_v50 = vsel %vm816_vm8, %v1319_v49, 0.0 }
 0x544   : > { %1326 = vadd.xlane.f32.xlu0 %v1325_v50  ;;  %1471 = vmatpush.msra.mxu2 %v1439_v44 }
 0x5ab   : > { %v1324_v62 = vpop.xlane.xlu2 %1323 }
 0x5ac   : > { %v1335_v63 = vmul.f32 %v2323_v53, %v1324_v62 }
 0x5ae   : > { %v1337_v54 = vsub.f32 %v1318_v45, %v1335_v63  ;;  %v1438_v45 = vld [vmem:[%s2130_s27] sm:$0xff] }
 0x5af   : > { %1472 = vmatpush.msra.mxu2 %v1438_v45 }
 0x5b0   : > { %v1339_v0 = vmul.f32 %v1337_v54, %v1337_v54 }
 0x5b2   : > { %v1341_v1 = vsel %vm816_vm8, %v1339_v0, 0.0 }
 0x5b3   : > { %1342 = vadd.xlane.f32.xlu1 %v1341_v1 }
 0x5b7   : > { %v1327_v2 = vpop.xlane.xlu0 %1326 }
 0x5b8   : > { %v1336_v3 = vmul.f32 %v2323_v53, %v1327_v2 }
 0x5ba   : > { %v1338_v5 = vsub.f32 %v1319_v49, %v1336_v3 }
 0x5bc   : > { %v1340_v6 = vmul.f32 %v1338_v5, %v1338_v5 }
 0x5be   : > { %v1344_v7 = vsel %vm816_vm8, %v1340_v6, 0.0 }
 0x5bf   : > { %1345 = vadd.xlane.f32.xlu0 %v1344_v7 }
 0x626   : > { %v1343_v11 = vpop.xlane.xlu1 %1342 }
 0x627   : > { %v1347_v12 = vmul.f32 %v1343_v11, %v2323_v53 }
 0x629   : > { %v1349_v13 = vadd.f32 1e-12, %v1347_v12 }
 0x62b   : > { %1919 = vrsqrt.f32 %v1349_v13  ;;  %vm1357_vm6 = vweird.f32 %v1349_v13 }
 0x631   : > { %v1920_v14 = vpop.eup %1919 }
 0x632   : > { %v1352_v15 = vmul.f32 %v1920_v14, %v1349_v13  ;;  %v1346_v17 = vpop.xlane.xlu0 %1345  ;;  %vm1358_vm5 = vweird.f32 %v1920_v14 }
 0x633   : > { %v1348_v18 = vmul.f32 %v1346_v17, %v2323_v53  ;;  %vm1359_vm7 = vmor %vm1357_vm6, %vm1358_vm5 }
 0x634   : > { %v1353_v19 = vmul.f32 %v1920_v14, %v1352_v15 }
 0x635   : > { %v1350_v16 = vadd.f32 1e-12, %v1348_v18 }
 0x636   : > { %v1354_v20 = vmul.f32 0.5, %v1353_v19 }
 0x637   : > { %1921 = vrsqrt.f32 %v1350_v16  ;;  %vm1367_vm10 = vweird.f32 %v1350_v16 }
 0x638   : > { %v1355_v21 = vsub.f32 1.5, %v1354_v20 }
 0x63a   : > { %v1356_v22 = vmul.f32 %v1920_v14, %v1355_v21 }
 0x63c   : > { %v1360_v24 = vsel %vm1359_vm7, %v1920_v14, %v1356_v22 }
 0x63d   : > { %v1922_v59 = vpop.eup %1921  ;;  %v1371_v25 = vmul.f32 %v1360_v24, %v1337_v54 }
 0x63e   : > { %v1362_v26 = vmul.f32 %v1922_v59, %v1350_v16  ;;  %vm1368_vm9 = vweird.f32 %v1922_v59 }
 0x63f   : > { %v1376_v28 = vmul.f32 %v1879_v23, %v1371_v25  ;;  %vm1369_vm11 = vmor %vm1367_vm10, %vm1368_vm9 }
 0x640   : > { %v1363_v30 = vmul.f32 %v1922_v59, %v1362_v26 }
 0x641   : > { %v1381_v31 = vadd.f32 %v1880_v58, %v1376_v28 }
 0x642   : > { %v1364_v32 = vmul.f32 0.5, %v1363_v30 }
 0x643   : > { %1803 = vmatmul.msk.f32.vlgmr.msra.gmra.mxu1 %vm816_vm8, %v1381_v31 }
 0x644   : > { %v1365_v27 = vsub.f32 1.5, %v1364_v32 }
 0x646   : > { %v1366_v33 = vmul.f32 %v1922_v59, %v1365_v27 }
 0x648   : > { %v1370_v34 = vsel %vm1369_vm11, %v1922_v59, %v1366_v33 }
 0x649   : > { %v1372_v36 = vmul.f32 %v1370_v34, %v1338_v5 }
 0x64b   : > { %v1377_v29 = vmul.f32 %v1879_v23, %v1372_v36 }
 0x64d   : > { %v1382_v37 = vadd.f32 %v1880_v58, %v1377_v29 }
 0x64f   : > { %1804 = vmatmul.msk.f32.gmra.mxu1 %vm816_vm8, %v1382_v37 }
 0x6c0   : > { %v1414_v47 = vpop.f32.mrf.mxu1 }
 0x6c1   : > { %v1415_v48 = vadd.f32 %v1881_v46, %v1414_v47 }
 0x6c3   : > { %v1422_v49 = vmul.f32 0.044715, %v1415_v48  ;;  %v1420_v0 = vmul.f32 0.5, %v1415_v48 }
 0x6c5   : > { %v1424_v50 = vmul.f32 %v1422_v49, %v1415_v48 }
 0x6c7   : > { %v1426_v51 = vmul.f32 %v1424_v50, %v1415_v48 }
 0x6c9   : > { %v1428_v35 = vadd.f32 %v1426_v51, %v1415_v48 }
 0x6cb   : > { %v1430_v52 = vmul.f32 0.7978846, %v1428_v35 }
 0x6cc   : > { %v1417_v55 = vpop.f32.mrf.mxu1 }
 0x6cd   : > { %1923 = vtanh.f32 %v1430_v52  ;;  %v1418_v56 = vadd.f32 %v1881_v46, %v1417_v55 }
 0x6cf   : > { %v1423_v57 = vmul.f32 0.044715, %v1418_v56  ;;  %v1421_v7 = vmul.f32 0.5, %v1418_v56 }
 0x6d1   : > { %v1425_v62 = vmul.f32 %v1423_v57, %v1418_v56 }
 0x6d3   : > { %v1924_v63 = vpop.eup %1923  ;;  %v1427_v54 = vmul.f32 %v1425_v62, %v1418_v56 }
 0x6d4   : > { %v1434_v1 = vadd.f32 1.0, %v1924_v63 }
 0x6d5   : > { %v1429_v2 = vadd.f32 %v1427_v54, %v1418_v56 }
 0x6d6   : > { %v1436_v3 = vmul.f32 %v1434_v1, %v1420_v0 }
 0x6d7   : > { %v1431_v5 = vmul.f32 0.7978846, %v1429_v2 }
 0x6d8   : > { %1805 = vmatmul.msk.f32.vlgmr.msra.gmra.mxu2 %vm1450_vm12, %v1436_v3 }
 0x6d9   : > { %1925 = vtanh.f32 %v1431_v5 }
 0x6df   : > { %v1926_v6 = vpop.eup %1925 }
 0x6e0   : > { %v1435_v8 = vadd.f32 1.0, %v1926_v6 }
 0x6e2   : > { %v1437_v9 = vmul.f32 %v1435_v8, %v1421_v7 }
 0x6e4   : > { %1806 = vmatmul.msk.f32.gmra.mxu2 %vm1450_vm12, %v1437_v9 }
 0x75b   : > { %v1474_v10 = vpop.f32.mrf.mxu2 }
 0x75c   : > { %v1475_v11 = vadd.f32 %v1882_v4, %v1474_v10 }
 0x75e   : > { %v1480_v12 = vadd.f32 %v1475_v11, %v1381_v31 }
 0x760   : > { %v1484_v13 = vsel %vm816_vm8, %v1480_v12, 0.0 }
 0x761   : > { %1485 = vadd.xlane.f32.xlu1 %v1484_v13 }
 0x767   : > { %v1477_v14 = vpop.f32.mrf.mxu2 }
 0x768   : > { %v1478_v15 = vadd.f32 %v1882_v4, %v1477_v14 }
 0x76a   : > { %v1481_v17 = vadd.f32 %v1478_v15, %v1382_v37 }
 0x76c   : > { %v1487_v18 = vsel %vm816_vm8, %v1481_v17, 0.0 }
 0x76d   : > { %1488 = vadd.xlane.f32.xlu0 %v1487_v18 }
 0x7d4   : > { %v1486_v19 = vpop.xlane.xlu1 %1485 }
 0x7d5   : > { %v1490_v16 = vmul.f32 %v1486_v19, %v2323_v53 }
 0x7d7   : > { %v1492_v20 = vsub.f32 %v1480_v12, %v1490_v16 }
 0x7d9   : > { %v1494_v21 = vmul.f32 %v1492_v20, %v1492_v20 }
 0x7db   : > { %v1496_v22 = vsel %vm816_vm8, %v1494_v21, 0.0 }
 0x7dc   : > { %1497 = vadd.xlane.f32.xlu1 %v1496_v22 }
 0x7e0   : > { %v1489_v23 = vpop.xlane.xlu0 %1488 }
 0x7e1   : > { %v1491_v24 = vmul.f32 %v1489_v23, %v2323_v53 }
 0x7e3   : > { %v1493_v59 = vsub.f32 %v1481_v17, %v1491_v24 }
 0x7e5   : > { %v1495_v25 = vmul.f32 %v1493_v59, %v1493_v59 }
 0x7e7   : > { %v1499_v58 = vsel %vm816_vm8, %v1495_v25, 0.0 }
 0x7e8   : > { %1500 = vadd.xlane.f32.xlu0 %v1499_v58 }
 0x84f   : > { %v1498_v26 = vpop.xlane.xlu1 %1497 }
 0x850   : > { %v1502_v28 = vmul.f32 %v1498_v26, %v2323_v53 }
 0x852   : > { %v1504_v30 = vadd.f32 1e-12, %v1502_v28 }
 0x854   : > { %1927 = vrsqrt.f32 %v1504_v30  ;;  %vm1512_vm14 = vweird.f32 %v1504_v30 }
 0x85a   : > { %v1928_v31 = vpop.eup %1927 }
 0x85b   : > { %v1507_v32 = vmul.f32 %v1928_v31, %v1504_v30  ;;  %v1501_v27 = vpop.xlane.xlu0 %1500  ;;  %vm1513_vm13 = vweird.f32 %v1928_v31 }
 0x85c   : > { %v1503_v33 = vmul.f32 %v1501_v27, %v2323_v53  ;;  %vm1514_vm15 = vmor %vm1512_vm14, %vm1513_vm13  ;;  %v1884_v53 = vld [vmem:[%s733_s16] ss:$0 sm:$0xff] }
 0x85d   : > { %v1508_v34 = vmul.f32 %v1928_v31, %v1507_v32 }
 0x85e   : > { %v1505_v36 = vadd.f32 1e-12, %v1503_v33 }
 0x85f   : > { %v1509_v29 = vmul.f32 0.5, %v1508_v34 }
 0x860   : > { %1929 = vrsqrt.f32 %v1505_v36  ;;  %vm1522_vm1 = vweird.f32 %v1505_v36 }
 0x861   : > { %v1510_v37 = vsub.f32 1.5, %v1509_v29 }
 0x863   : > { %v1511_v38 = vmul.f32 %v1928_v31, %v1510_v37 }
 0x865   : > { %v1515_v40 = vsel %vm1514_vm15, %v1928_v31, %v1511_v38 }
 0x866   : > { %v1930_v41 = vpop.eup %1929  ;;  %v1526_v42 = vmul.f32 %v1515_v40, %v1492_v20 }
 0x867   : > { %v1517_v43 = vmul.f32 %v1930_v41, %v1505_v36  ;;  %vm1523_vm0 = vweird.f32 %v1930_v41 }
 0x868   : > { %v1531_v44 = vmul.f32 %v1883_v39, %v1526_v42  ;;  %vm1524_vm2 = vmor %vm1522_vm1, %vm1523_vm0 }
 0x869   : > { %v1518_v45 = vmul.f32 %v1930_v41, %v1517_v43 }
 0x86a   : > { %v1536_v46 = vadd.f32 %v1884_v53, %v1531_v44 }
 0x86b   : > { %v1519_v47 = vmul.f32 0.5, %v1518_v45 }
 0x86c   : > { %1538 = vst.msk [vmem:[#allocation2] sm:$0xff] %vm816_vm8, %v1536_v46 }
 0x86d   : > { %v1520_v48 = vsub.f32 1.5, %v1519_v47 }
 0x86f   : > { %v1521_v49 = vmul.f32 %v1930_v41, %v1520_v48 }
 0x871   : > { %v1525_v50 = vsel %vm1524_vm2, %v1930_v41, %v1521_v49 }
 0x872   : > { %v1527_v51 = vmul.f32 %v1525_v50, %v1493_v59 }
 0x874   : > { %v1532_v35 = vmul.f32 %v1883_v39, %v1527_v51  ;;  %1543 = sbr.rel (%p1807_p5) target bundleno = 2437 (0x985), region = 100 }
 0x876   : > { %v1537_v52 = vadd.f32 %v1884_v53, %v1532_v35 }
 0x878   : > { %1539 = vst.msk [vmem:[#allocation2 + $0x8] sm:$0xff] %vm816_vm8, %v1537_v52 }
 0x879   : > { %1566 = vmatpush.msra.mxu0 %v1537_v52  ;;  %v1545_v55 = vshrl.u32 %v848_v60, 7  ;;  %v1575_v56 = vld [vmem:[%s2456_s20 + $0x18] sm:$0xff]  ;;  %v1574_v57 = vld [vmem:[%s2456_s20 + $0x10] sm:$0xff]  ;;  %v1573_v63 = vld [vmem:[%s2456_s20 + $0x8] sm:$0xff]  ;;  %v1979_v54 = vmov 0.0   ;;  %vm1604_vm5 = vcmask 254976  }
 0x87a   : > { %1595 = vmatpush.msra.mxu1 %v1575_v56  ;;  %v1572_v0 = vld [vmem:[%s2456_s20] sm:$0xff] }
 0x87b   : > { %1567 = vmatpush.msra.mxu0 %v1536_v46  ;;  %v1546_v62 = vmul.u32 8, %v1545_v55  ;;  %v1931_v2 = vld [vmem:[%s2457_s6] ss:$0 sm:$0xff] }
 0x87c   : > { %1596 = vmatpush.msra.mxu1 %v1574_v57 }
 0x87d   : > { %vm1547_vm4 = vcmp.eq.s32.totalorder %v2187_v61, %v1546_v62 }
 0x87e   : > { %v1548_v60 = vsel %vm1547_vm4, 1.0, %v1979_v54  ;;  %1597 = vmatpush.msra.mxu1 %v1573_v63 }
 0x87f   : > { %1808 = vmatmul.msk.f32.vlgmr.msra.gmra.mxu0 %vm899_vm3, %v1548_v60 }
 0x880   : > { %1598 = vmatpush.msra.mxu1 %v1572_v0 }
 0x8fc   : > { %v1569_v1 = vpop.f32.mrf.mxu0 }
 0x8fd   : > { %1809 = vmatmul.msk.f32.vlgmr.msra.gmra.mxu1 %vm816_vm8, %v1569_v1 }
 0x97a   : > { %v1600_v3 = vpop.f32.mrf.mxu1 }
 0x97b   : > { %v1601_v5 = vadd.f32 %v1931_v2, %v1600_v3 }
 0x97d   : > { %1932 = vtanh.f32 %v1601_v5 }
 0x983   : > { %v1933_v61 = vpop.eup %1932 }
 0x984   : > { %1605 = vst.msk [vmem:[#allocation3] sm:$0x3] %vm1604_vm5, %v1933_v61 }
 0x985 PF: > { %p1822_p6 = scmp.eq.s32.totalorder %s2082_s28, 1  ;;  %s1980_s27 = smov [#allocation3]  }
 0x986   : > { %s1612_s0 = sshll.u32 %s1980_s27, 4  ;;  %s2458_s23 = sld [smem:[#allocation15_spill]]  ;;  %s1613_s0 = int_to_ptr.vmem [resolvable:$true] %s1612_s0 }
 0x98c   : > { %s1614_s16 = sshll.u32 %s2458_s23, 4  ;;  %s1615_s16 = int_to_ptr.hbm [resolvable:$true] %s1614_s16 }
 0x98d   : > { %1819 = dma.vmem_to_hbm [thread:$0]  (%p1822_p6), %s1613_s0, 32, %s1615_s16, [#allocation4]  }
 0x98e   : > { %1967 = dma.done.wait (%p1822_p6), [#allocation4], 32  }
 0x98f   : > { %1969 = vsyncadd (%p1822_p6), [#allocation4], 4294967264 }
 0x990 PF: > { %s2459_s29 = sld [smem:[#allocation6_spill]] }
 0x996   : > { %s29_s27 = sadd.s32 1, %s2459_s29  }
 0x997   : > { %p26_p7 = scmp.ge.s32.totalorder %s29_s27, 4  }
 0x999   :  { %28 = sbr.rel (!%p26_p7) target bundleno = 10 (0xa), region = 160 }
 0x99e   :  { %1628 = vsyncpa [#allocation4], 1 }
 0x99f   :  { %1630 = vsyncpa [#allocation4 + $0x1], 1 }

</bundles_post_ra>
